<compile_context>
chip_gen: v6e
topology: v6e:2x2x1
jax: 0.10.0
libtpu: 0.0.40
codegen_flags: <defaults>
</compile_context>

<pallas_src>
import jax
import jax.numpy as jnp
from jax import lax
from jax.experimental import pallas as pl
from jax.experimental.pallas import tpu as pltpu


def _lstm_traj_kernel(xproj_ref, wih_ref, whh_ref, b_ref, wfc_ref, bfc_ref,
                      out_ref, gx_ref, seq_ref):
    """One grid step == one LSTM layer.

    xproj_ref : (4, T*Bp, H)  layer-0 per-gate input projection (x@W_ih0 + b0)
    wih_ref   : (1, 4, H, H)  this layer's per-gate input weights (unused at l=0)
    whh_ref   : (1, 4, H, H)  this layer's per-gate recurrent weights
    b_ref     : (1, 4, 1, H)  this layer's combined per-gate bias (unused at l=0)
    wfc_ref   : (H, O2p)      final linear, lane-padded
    bfc_ref   : (1, O2p)
    out_ref   : (Bp, O2p)     written only at the last layer
    gx_ref    : (4, T*Bp, H)  VMEM scratch: per-gate input-projection of this layer
    seq_ref   : (T*Bp, H)     VMEM scratch: hidden sequence (carried to next layer)
    """
    TB, H = seq_ref.shape
    Bp = out_ref.shape[0]
    T = TB // Bp
    layer = pl.program_id(0)
    num_layers = pl.num_programs(0)

    # ---- input->gate projection, hoisted out of the recurrence (one matmul) ----
    @pl.when(layer == 0)
    def _():
        gx_ref[...] = xproj_ref[...]          # precomputed in the wrapper

    @pl.when(layer > 0)
    def _():
        prev = seq_ref[...]                   # previous layer's hidden sequence
        for g in range(4):
            gx_ref[g] = (
                jnp.dot(prev, wih_ref[0, g], preferred_element_type=jnp.float32)
                + b_ref[0, g]
            )

    # ---- recurrent weights: load once per layer, not once per timestep ----
    whh_g = [whh_ref[0, g] for g in range(4)]

    def step(t, carry):
        h, c = carry
        if isinstance(t, int):                # statically unrolled path
            lo = t * Bp
        else:                                 # fori_loop path
            lo = pl.multiple_of(t * Bp, Bp)
        row = pl.ds(lo, Bp)
        pre = [gx_ref[g, row, :]
               + jnp.dot(h, whh_g[g], preferred_element_type=jnp.float32)
               for g in range(4)]
        i_g = jax.nn.sigmoid(pre[0])
        f_g = jax.nn.sigmoid(pre[1])
        g_g = jnp.tanh(pre[2])
        o_g = jax.nn.sigmoid(pre[3])
        c_new = f_g * c + i_g * g_g
        h_new = o_g * jnp.tanh(c_new)
        seq_ref[row, :] = h_new               # gx already consumed: safe overwrite
        return h_new, c_new

    zeros = jnp.zeros((Bp, H), jnp.float32)
    if T <= 64:
        carry = (zeros, zeros)
        for t in range(T):                    # static unroll: static ref indices
            carry = step(t, carry)
        h_last = carry[0]
    else:
        h_last, _ = lax.fori_loop(0, T, step, (zeros, zeros), unroll=8)

    # TODO(synk): inter-layer dropout omitted (inference/eval semantics).

    @pl.when(layer == num_layers - 1)
    def _():
        out_ref[...] = (
            jnp.dot(h_last, wfc_ref[...], preferred_element_type=jnp.float32)
            + bfc_ref[...]
        )


def init_params(key, hidden_size, num_layers, output_seq_len, input_size=2):
    """Deterministic PyTorch-LSTM-style init (uniform +/- 1/sqrt(H)), kernel layout."""
    H = hidden_size
    O2 = 2 * output_seq_len
    O2p = ((O2 + 127) // 128) * 128
    s = float(H) ** -0.5
    keys = jax.random.split(key, 4 * num_layers + 2)
    k = iter(keys)
    w_ih0 = None
    wihT, whhT, bias = [], [], []
    for layer in range(num_layers):
        in_dim = input_size if layer == 0 else H
        w_ih = jax.random.uniform(next(k), (4 * H, in_dim), jnp.float32, -s, s)
        w_hh = jax.random.uniform(next(k), (4 * H, H), jnp.float32, -s, s)
        b_ih = jax.random.uniform(next(k), (4 * H,), jnp.float32, -s, s)
        b_hh = jax.random.uniform(next(k), (4 * H,), jnp.float32, -s, s)
        if layer == 0:
            w_ih0 = w_ih                                        # (4H, 2): used in wrapper
            wihT.append(jnp.zeros((4, H, H), jnp.float32))      # placeholder, unused in kernel
        else:
            wihT.append(w_ih.reshape(4, H, H).transpose(0, 2, 1))   # (4, H, H)
        whhT.append(w_hh.reshape(4, H, H).transpose(0, 2, 1))       # (4, H, H)
        bias.append((b_ih + b_hh).reshape(4, 1, H))                 # (4, 1, H)
    w_fc = jax.random.uniform(next(k), (O2, H), jnp.float32, -s, s)
    b_fc = jax.random.uniform(next(k), (O2,), jnp.float32, -s, s)
    wfcT = jnp.zeros((H, O2p), jnp.float32).at[:, :O2].set(w_fc.T)  # lane-padded
    bfc = jnp.zeros((1, O2p), jnp.float32).at[:, :O2].set(b_fc)
    return (w_ih0, jnp.stack(wihT), jnp.stack(whhT), jnp.stack(bias), wfcT, bfc)


def graph_trajectory_predictor_forward(x, params, *, hidden_size, num_layers,
                                       output_seq_len):
    """x: (B, input_seq_len, 2) -> (B, output_seq_len, 2)."""
    w_ih0, wihT, whhT, bias, wfcT, bfc = params
    B, T, in_size = x.shape
    H = hidden_size
    O2 = 2 * output_seq_len
    O2p = wfcT.shape[1]
    Bp = ((B + 7) // 8) * 8                       # pad batch to f32 sublane multiple

    # glue: pad batch, go time-major, and fold layer-0's tiny K=2 input projection
    # (plus its bias) into one XLA einsum -> (4, T*Bp, H).
    x_pad = jnp.zeros((Bp, T, in_size), jnp.float32).at[:B].set(x.astype(jnp.float32))
    x_tm = jnp.transpose(x_pad, (1, 0, 2))                        # (T, Bp, 2)
    w_ih0T = w_ih0.reshape(4, H, in_size).transpose(0, 2, 1)      # (4, 2, H)
    x_proj = (jnp.einsum("tbi,gih->gtbh", x_tm, w_ih0T)
              + bias[0][:, None, :, :]).reshape(4, T * Bp, H)

    footprint = 4 * (
        4 * T * Bp * H                       # x_proj input
        + 2 * (2 * 4 * H * H + 4 * H)        # double-buffered per-layer wih+whh+bias
        + H * O2p + O2p                      # fc weight + bias
        + Bp * O2p                           # output block
        + 4 * T * Bp * H                     # gx scratch
        + T * Bp * H                         # seq scratch
    )
    vmem_limit = int(min(128 * 1024 * 1024, max(32 * 1024 * 1024, 2 * footprint)))

    out = pl.pallas_call(
        _lstm_traj_kernel,
        out_shape=jax.ShapeDtypeStruct((Bp, O2p), jnp.float32),
        grid=(num_layers,),                                   # stream weights per layer
        in_specs=[
            pl.BlockSpec((4, T * Bp, H), lambda l: (0, 0, 0)),    # x_proj (resident)
            pl.BlockSpec((1, 4, H, H), lambda l: (l, 0, 0, 0)),   # W_ih  (per layer)
            pl.BlockSpec((1, 4, H, H), lambda l: (l, 0, 0, 0)),   # W_hh  (per layer)
            pl.BlockSpec((1, 4, 1, H), lambda l: (l, 0, 0, 0)),   # bias  (per layer)
            pl.BlockSpec((H, O2p), lambda l: (0, 0)),             # FC weight
            pl.BlockSpec((1, O2p), lambda l: (0, 0)),             # FC bias
        ],
        out_specs=pl.BlockSpec((Bp, O2p), lambda l: (0, 0)),
        scratch_shapes=[pltpu.VMEM((4, T * Bp, H), jnp.float32),  # per-gate input proj
                        pltpu.VMEM((T * Bp, H), jnp.float32)],    # hidden sequence
        compiler_params=pltpu.CompilerParams(
            dimension_semantics=("arbitrary",),
            vmem_limit_bytes=vmem_limit),
    )(x_proj, wihT, whhT, bias, wfcT, bfc)
    return out[:B, :O2].reshape(B, output_seq_len, 2)


def _ref_forward(x, params, hidden_size, num_layers, output_seq_len):
    """Pure-JAX reference, same packed params."""
    w_ih0, wihT, whhT, bias, wfcT, bfc = params
    H = hidden_size
    B, T, in_size = x.shape
    O2 = 2 * output_seq_len
    x_tm = jnp.transpose(x, (1, 0, 2)).astype(jnp.float32)        # (T, B, 2)
    w_ih0T = w_ih0.reshape(4, H, in_size).transpose(0, 2, 1)      # (4, 2, H)
    layer_in = x_tm
    h = jnp.zeros((B, H), jnp.float32)
    for layer in range(num_layers):
        h = jnp.zeros((B, H), jnp.float32)
        c = jnp.zeros((B, H), jnp.float32)
        outs = []
        for t in range(T):
            xt = layer_in[t]
            pre = []
            for g in range(4):
                w_in = w_ih0T[g] if layer == 0 else wihT[layer, g]
                pre.append(xt @ w_in + h @ whhT[layer, g] + bias[layer, g])
            i_g = jax.nn.sigmoid(pre[0])
            f_g = jax.nn.sigmoid(pre[1])
            g_g = jnp.tanh(pre[2])
            o_g = jax.nn.sigmoid(pre[3])
            c = f_g * c + i_g * g_g
            h = o_g * jnp.tanh(c)
            outs.append(h)
        layer_in = jnp.stack(outs, 0)
    out = h @ wfcT + bfc
    return out[:, :O2].reshape(B, output_seq_len, 2)


if __name__ == "__main__":
    B, T, H, L, OUT_SEQ = 2, 8, 32, 2, 8   # batch, input_seq_len, hidden, layers, output_seq_len

    key = jax.random.PRNGKey(0)
    kx, kp = jax.random.split(key)
    x = jax.random.normal(kx, (B, T, 2), jnp.float32)   # (batch, input_seq_len, 2)
    params = init_params(kp, H, L, OUT_SEQ)

    out = graph_trajectory_predictor_forward(
        x, params, hidden_size=H, num_layers=L, output_seq_len=OUT_SEQ)
    out = jax.block_until_ready(out)
    assert out.shape == (B, OUT_SEQ, 2)

    ref = _ref_forward(x, params, H, L, OUT_SEQ)
    err = jnp.max(jnp.abs(out - ref))
    assert jnp.allclose(out, ref, atol=1e-5, rtol=1e-5), f"max abs err {err}"

    print("KERNEL_OK")
</pallas_src>

<mosaic_0001>
module attributes {stable_mosaic.version = 11 : i64} {
  func.func @_lstm_traj_kernel(%arg0: i32, %arg1: memref<4x64x32xf32, #tpu.memory_space<vmem>>, %arg2: memref<1x4x32x32xf32, #tpu.memory_space<vmem>>, %arg3: memref<1x4x32x32xf32, #tpu.memory_space<vmem>>, %arg4: memref<1x4x1x32xf32, #tpu.memory_space<vmem>>, %arg5: memref<32x128xf32, #tpu.memory_space<vmem>>, %arg6: memref<1x128xf32, #tpu.memory_space<vmem>>, %arg7: memref<8x128xf32, #tpu.memory_space<vmem>>, %arg8: memref<4x64x32xf32, #tpu.memory_space<vmem>>, %arg9: memref<64x32xf32, #tpu.memory_space<vmem>>) attributes {dimension_semantics = [#tpu.dimension_semantics<arbitrary>], iteration_bounds = array<i64: 2>, scalar_prefetch = 0 : i64, scratch_operands = 2 : i64, tpu.core_type = #tpu.core_type<tc>, window_params = [{pipeline_mode = #tpu.pipeline_mode<synchronous>, transform_indices = @transform_0, window_bounds = array<i64: 4, 64, 32>}, {transform_indices = @transform_1, window_bounds = array<i64: 1, 4, 32, 32>}, {transform_indices = @transform_2, window_bounds = array<i64: 1, 4, 32, 32>}, {transform_indices = @transform_3, window_bounds = array<i64: 1, 4, 1, 32>}, {pipeline_mode = #tpu.pipeline_mode<synchronous>, transform_indices = @transform_4, window_bounds = array<i64: 32, 128>}, {pipeline_mode = #tpu.pipeline_mode<synchronous>, transform_indices = @transform_5, window_bounds = array<i64: 1, 128>}, {pipeline_mode = #tpu.pipeline_mode<synchronous>, transform_indices = @transform_6, window_bounds = array<i64: 8, 128>}]} {
    %c0_i32 = arith.constant 0 : i32
    %0 = arith.cmpi eq, %arg0, %c0_i32 : i32
    %1 = arith.extui %0 : i1 to i32
    %c0_i32_0 = arith.constant 0 : i32
    %2 = arith.cmpi ne, %1, %c0_i32_0 : i32
    scf.if %2 {
      %c0_177 = arith.constant 0 : index
      %c0_178 = arith.constant 0 : index
      %c0_179 = arith.constant 0 : index
      %322 = vector.load %arg1[%c0_177, %c0_178, %c0_179] : memref<4x64x32xf32, #tpu.memory_space<vmem>>, vector<4x64x32xf32>
      %c0_180 = arith.constant 0 : index
      %c0_181 = arith.constant 0 : index
      %c0_182 = arith.constant 0 : index
      %323 = vector.load %arg8[%c0_180, %c0_181, %c0_182] : memref<4x64x32xf32, #tpu.memory_space<vmem>>, vector<4x64x32xf32>
      tpu.vector_store %arg8[%c0_180, %c0_181, %c0_182], %322 {strides = array<i32>} : memref<4x64x32xf32, #tpu.memory_space<vmem>>, vector<4x64x32xf32>,
    } else {
    }
    %c0_i32_1 = arith.constant 0 : i32
    %3 = arith.cmpi sgt, %arg0, %c0_i32_1 : i32
    %4 = arith.extui %3 : i1 to i32
    %c0_i32_2 = arith.constant 0 : i32
    %5 = arith.cmpi ne, %4, %c0_i32_2 : i32
    scf.if %5 {
      %c0_177 = arith.constant 0 : index
      %c0_178 = arith.constant 0 : index
      %322 = vector.load %arg9[%c0_177, %c0_178] : memref<64x32xf32, #tpu.memory_space<vmem>>, vector<64x32xf32>
      %c0_179 = arith.constant 0 : index
      %c0_180 = arith.constant 0 : index
      %c0_181 = arith.constant 0 : index
      %c0_182 = arith.constant 0 : index
      %323 = vector.load %arg2[%c0_179, %c0_180, %c0_181, %c0_182] : memref<1x4x32x32xf32, #tpu.memory_space<vmem>>, vector<1x1x32x32xf32>
      %324 = vector.shape_cast %323 : vector<1x1x32x32xf32> to vector<32x32xf32>
      %cst_183 = arith.constant dense<0.000000e+00> : vector<64x32xf32>
      %325 = tpu.matmul %322, %324, %cst_183 {dimension_numbers = #tpu.dot_dimension_numbers<[1], [0], [0], [1], [0, 0, 1, 1], [], []>} : vector<64x32xf32>, vector<32x32xf32>, vector<64x32xf32> -> vector<64x32xf32>
      %c0_184 = arith.constant 0 : index
      %c0_185 = arith.constant 0 : index
      %c0_186 = arith.constant 0 : index
      %c0_187 = arith.constant 0 : index
      %326 = vector.load %arg4[%c0_184, %c0_185, %c0_186, %c0_187] : memref<1x4x1x32xf32, #tpu.memory_space<vmem>>, vector<1x1x1x32xf32>
      %327 = vector.shape_cast %326 : vector<1x1x1x32xf32> to vector<1x32xf32>
      %328 = vector.broadcast %327 : vector<1x32xf32> to vector<64x32xf32>
      %329 = arith.addf %325, %328 : vector<64x32xf32>
      %c0_188 = arith.constant 0 : index
      %c0_189 = arith.constant 0 : index
      %c0_190 = arith.constant 0 : index
      %330 = vector.load %arg8[%c0_188, %c0_189, %c0_190] : memref<4x64x32xf32, #tpu.memory_space<vmem>>, vector<1x64x32xf32>
      %331 = vector.shape_cast %330 : vector<1x64x32xf32> to vector<64x32xf32>
      %332 = vector.shape_cast %329 : vector<64x32xf32> to vector<1x64x32xf32>
      tpu.vector_store %arg8[%c0_188, %c0_189, %c0_190], %332 {strides = array<i32>} : memref<4x64x32xf32, #tpu.memory_space<vmem>>, vector<1x64x32xf32>,
      %c0_191 = arith.constant 0 : index
      %c1_192 = arith.constant 1 : index
      %c0_193 = arith.constant 0 : index
      %c0_194 = arith.constant 0 : index
      %333 = vector.load %arg2[%c0_191, %c1_192, %c0_193, %c0_194] : memref<1x4x32x32xf32, #tpu.memory_space<vmem>>, vector<1x1x32x32xf32>
      %334 = vector.shape_cast %333 : vector<1x1x32x32xf32> to vector<32x32xf32>
      %cst_195 = arith.constant dense<0.000000e+00> : vector<64x32xf32>
      %335 = tpu.matmul %322, %334, %cst_195 {dimension_numbers = #tpu.dot_dimension_numbers<[1], [0], [0], [1], [0, 0, 1, 1], [], []>} : vector<64x32xf32>, vector<32x32xf32>, vector<64x32xf32> -> vector<64x32xf32>
      %c0_196 = arith.constant 0 : index
      %c1_197 = arith.constant 1 : index
      %c0_198 = arith.constant 0 : index
      %c0_199 = arith.constant 0 : index
      %336 = vector.load %arg4[%c0_196, %c1_197, %c0_198, %c0_199] : memref<1x4x1x32xf32, #tpu.memory_space<vmem>>, vector<1x1x1x32xf32>
      %337 = vector.shape_cast %336 : vector<1x1x1x32xf32> to vector<1x32xf32>
      %338 = vector.broadcast %337 : vector<1x32xf32> to vector<64x32xf32>
      %339 = arith.addf %335, %338 : vector<64x32xf32>
      %c1_200 = arith.constant 1 : index
      %c0_201 = arith.constant 0 : index
      %c0_202 = arith.constant 0 : index
      %340 = vector.load %arg8[%c1_200, %c0_201, %c0_202] : memref<4x64x32xf32, #tpu.memory_space<vmem>>, vector<1x64x32xf32>
      %341 = vector.shape_cast %340 : vector<1x64x32xf32> to vector<64x32xf32>
      %342 = vector.shape_cast %339 : vector<64x32xf32> to vector<1x64x32xf32>
      tpu.vector_store %arg8[%c1_200, %c0_201, %c0_202], %342 {strides = array<i32>} : memref<4x64x32xf32, #tpu.memory_space<vmem>>, vector<1x64x32xf32>,
      %c0_203 = arith.constant 0 : index
      %c2_204 = arith.constant 2 : index
      %c0_205 = arith.constant 0 : index
      %c0_206 = arith.constant 0 : index
      %343 = vector.load %arg2[%c0_203, %c2_204, %c0_205, %c0_206] : memref<1x4x32x32xf32, #tpu.memory_space<vmem>>, vector<1x1x32x32xf32>
      %344 = vector.shape_cast %343 : vector<1x1x32x32xf32> to vector<32x32xf32>
      %cst_207 = arith.constant dense<0.000000e+00> : vector<64x32xf32>
      %345 = tpu.matmul %322, %344, %cst_207 {dimension_numbers = #tpu.dot_dimension_numbers<[1], [0], [0], [1], [0, 0, 1, 1], [], []>} : vector<64x32xf32>, vector<32x32xf32>, vector<64x32xf32> -> vector<64x32xf32>
      %c0_208 = arith.constant 0 : index
      %c2_209 = arith.constant 2 : index
      %c0_210 = arith.constant 0 : index
      %c0_211 = arith.constant 0 : index
      %346 = vector.load %arg4[%c0_208, %c2_209, %c0_210, %c0_211] : memref<1x4x1x32xf32, #tpu.memory_space<vmem>>, vector<1x1x1x32xf32>
      %347 = vector.shape_cast %346 : vector<1x1x1x32xf32> to vector<1x32xf32>
      %348 = vector.broadcast %347 : vector<1x32xf32> to vector<64x32xf32>
      %349 = arith.addf %345, %348 : vector<64x32xf32>
      %c2_212 = arith.constant 2 : index
      %c0_213 = arith.constant 0 : index
      %c0_214 = arith.constant 0 : index
      %350 = vector.load %arg8[%c2_212, %c0_213, %c0_214] : memref<4x64x32xf32, #tpu.memory_space<vmem>>, vector<1x64x32xf32>
      %351 = vector.shape_cast %350 : vector<1x64x32xf32> to vector<64x32xf32>
      %352 = vector.shape_cast %349 : vector<64x32xf32> to vector<1x64x32xf32>
      tpu.vector_store %arg8[%c2_212, %c0_213, %c0_214], %352 {strides = array<i32>} : memref<4x64x32xf32, #tpu.memory_space<vmem>>, vector<1x64x32xf32>,
      %c0_215 = arith.constant 0 : index
      %c3_216 = arith.constant 3 : index
      %c0_217 = arith.constant 0 : index
      %c0_218 = arith.constant 0 : index
      %353 = vector.load %arg2[%c0_215, %c3_216, %c0_217, %c0_218] : memref<1x4x32x32xf32, #tpu.memory_space<vmem>>, vector<1x1x32x32xf32>
      %354 = vector.shape_cast %353 : vector<1x1x32x32xf32> to vector<32x32xf32>
      %cst_219 = arith.constant dense<0.000000e+00> : vector<64x32xf32>
      %355 = tpu.matmul %322, %354, %cst_219 {dimension_numbers = #tpu.dot_dimension_numbers<[1], [0], [0], [1], [0, 0, 1, 1], [], []>} : vector<64x32xf32>, vector<32x32xf32>, vector<64x32xf32> -> vector<64x32xf32>
      %c0_220 = arith.constant 0 : index
      %c3_221 = arith.constant 3 : index
      %c0_222 = arith.constant 0 : index
      %c0_223 = arith.constant 0 : index
      %356 = vector.load %arg4[%c0_220, %c3_221, %c0_222, %c0_223] : memref<1x4x1x32xf32, #tpu.memory_space<vmem>>, vector<1x1x1x32xf32>
      %357 = vector.shape_cast %356 : vector<1x1x1x32xf32> to vector<1x32xf32>
      %358 = vector.broadcast %357 : vector<1x32xf32> to vector<64x32xf32>
      %359 = arith.addf %355, %358 : vector<64x32xf32>
      %c3_224 = arith.constant 3 : index
      %c0_225 = arith.constant 0 : index
      %c0_226 = arith.constant 0 : index
      %360 = vector.load %arg8[%c3_224, %c0_225, %c0_226] : memref<4x64x32xf32, #tpu.memory_space<vmem>>, vector<1x64x32xf32>
      %361 = vector.shape_cast %360 : vector<1x64x32xf32> to vector<64x32xf32>
      %362 = vector.shape_cast %359 : vector<64x32xf32> to vector<1x64x32xf32>
      tpu.vector_store %arg8[%c3_224, %c0_225, %c0_226], %362 {strides = array<i32>} : memref<4x64x32xf32, #tpu.memory_space<vmem>>, vector<1x64x32xf32>,
    } else {
    }
    %c0 = arith.constant 0 : index
    %c0_3 = arith.constant 0 : index
    %c0_4 = arith.constant 0 : index
    %c0_5 = arith.constant 0 : index
    %6 = vector.load %arg3[%c0, %c0_3, %c0_4, %c0_5] : memref<1x4x32x32xf32, #tpu.memory_space<vmem>>, vector<1x1x32x32xf32>
    %7 = vector.shape_cast %6 : vector<1x1x32x32xf32> to vector<32x32xf32>
    %c0_6 = arith.constant 0 : index
    %c1 = arith.constant 1 : index
    %c0_7 = arith.constant 0 : index
    %c0_8 = arith.constant 0 : index
    %8 = vector.load %arg3[%c0_6, %c1, %c0_7, %c0_8] : memref<1x4x32x32xf32, #tpu.memory_space<vmem>>, vector<1x1x32x32xf32>
    %9 = vector.shape_cast %8 : vector<1x1x32x32xf32> to vector<32x32xf32>
    %c0_9 = arith.constant 0 : index
    %c2 = arith.constant 2 : index
    %c0_10 = arith.constant 0 : index
    %c0_11 = arith.constant 0 : index
    %10 = vector.load %arg3[%c0_9, %c2, %c0_10, %c0_11] : memref<1x4x32x32xf32, #tpu.memory_space<vmem>>, vector<1x1x32x32xf32>
    %11 = vector.shape_cast %10 : vector<1x1x32x32xf32> to vector<32x32xf32>
    %c0_12 = arith.constant 0 : index
    %c3 = arith.constant 3 : index
    %c0_13 = arith.constant 0 : index
    %c0_14 = arith.constant 0 : index
    %12 = vector.load %arg3[%c0_12, %c3, %c0_13, %c0_14] : memref<1x4x32x32xf32, #tpu.memory_space<vmem>>, vector<1x1x32x32xf32>
    %13 = vector.shape_cast %12 : vector<1x1x32x32xf32> to vector<32x32xf32>
    %cst = arith.constant 0.000000e+00 : f32
    %14 = vector.broadcast %cst : f32 to vector<8x32xf32>
    %c0_15 = arith.constant 0 : index
    %c0_16 = arith.constant 0 : index
    %c0_17 = arith.constant 0 : index
    %15 = vector.load %arg8[%c0_15, %c0_16, %c0_17] : memref<4x64x32xf32, #tpu.memory_space<vmem>>, vector<1x8x32xf32>
    %16 = vector.shape_cast %15 : vector<1x8x32xf32> to vector<8x32xf32>
    %cst_18 = arith.constant dense<0.000000e+00> : vector<8x32xf32>
    %17 = tpu.matmul %14, %7, %cst_18 {dimension_numbers = #tpu.dot_dimension_numbers<[1], [0], [0], [1], [0, 0, 1, 1], [], []>} : vector<8x32xf32>, vector<32x32xf32>, vector<8x32xf32> -> vector<8x32xf32>
    %18 = arith.addf %16, %17 : vector<8x32xf32>
    %c1_19 = arith.constant 1 : index
    %c0_20 = arith.constant 0 : index
    %c0_21 = arith.constant 0 : index
    %19 = vector.load %arg8[%c1_19, %c0_20, %c0_21] : memref<4x64x32xf32, #tpu.memory_space<vmem>>, vector<1x8x32xf32>
    %20 = vector.shape_cast %19 : vector<1x8x32xf32> to vector<8x32xf32>
    %cst_22 = arith.constant dense<0.000000e+00> : vector<8x32xf32>
    %21 = tpu.matmul %14, %9, %cst_22 {dimension_numbers = #tpu.dot_dimension_numbers<[1], [0], [0], [1], [0, 0, 1, 1], [], []>} : vector<8x32xf32>, vector<32x32xf32>, vector<8x32xf32> -> vector<8x32xf32>
    %22 = arith.addf %20, %21 : vector<8x32xf32>
    %c2_23 = arith.constant 2 : index
    %c0_24 = arith.constant 0 : index
    %c0_25 = arith.constant 0 : index
    %23 = vector.load %arg8[%c2_23, %c0_24, %c0_25] : memref<4x64x32xf32, #tpu.memory_space<vmem>>, vector<1x8x32xf32>
    %24 = vector.shape_cast %23 : vector<1x8x32xf32> to vector<8x32xf32>
    %cst_26 = arith.constant dense<0.000000e+00> : vector<8x32xf32>
    %25 = tpu.matmul %14, %11, %cst_26 {dimension_numbers = #tpu.dot_dimension_numbers<[1], [0], [0], [1], [0, 0, 1, 1], [], []>} : vector<8x32xf32>, vector<32x32xf32>, vector<8x32xf32> -> vector<8x32xf32>
    %26 = arith.addf %24, %25 : vector<8x32xf32>
    %c3_27 = arith.constant 3 : index
    %c0_28 = arith.constant 0 : index
    %c0_29 = arith.constant 0 : index
    %27 = vector.load %arg8[%c3_27, %c0_28, %c0_29] : memref<4x64x32xf32, #tpu.memory_space<vmem>>, vector<1x8x32xf32>
    %28 = vector.shape_cast %27 : vector<1x8x32xf32> to vector<8x32xf32>
    %cst_30 = arith.constant dense<0.000000e+00> : vector<8x32xf32>
    %29 = tpu.matmul %14, %13, %cst_30 {dimension_numbers = #tpu.dot_dimension_numbers<[1], [0], [0], [1], [0, 0, 1, 1], [], []>} : vector<8x32xf32>, vector<32x32xf32>, vector<8x32xf32> -> vector<8x32xf32>
    %30 = arith.addf %28, %29 : vector<8x32xf32>
    %31 = arith.negf %18 : vector<8x32xf32>
    %32 = math.exp %31 : vector<8x32xf32>
    %cst_31 = arith.constant 1.000000e+00 : f32
    %33 = vector.broadcast %cst_31 : f32 to vector<8x32xf32>
    %34 = arith.addf %33, %32 : vector<8x32xf32>
    %35 = arith.divf %33, %34 : vector<8x32xf32>
    %36 = arith.negf %22 : vector<8x32xf32>
    %37 = math.exp %36 : vector<8x32xf32>
    %cst_32 = arith.constant 1.000000e+00 : f32
    %38 = vector.broadcast %cst_32 : f32 to vector<8x32xf32>
    %39 = arith.addf %38, %37 : vector<8x32xf32>
    %40 = arith.divf %38, %39 : vector<8x32xf32>
    %41 = math.tanh %26 : vector<8x32xf32>
    %42 = arith.negf %30 : vector<8x32xf32>
    %43 = math.exp %42 : vector<8x32xf32>
    %cst_33 = arith.constant 1.000000e+00 : f32
    %44 = vector.broadcast %cst_33 : f32 to vector<8x32xf32>
    %45 = arith.addf %44, %43 : vector<8x32xf32>
    %46 = arith.divf %44, %45 : vector<8x32xf32>
    %47 = arith.mulf %40, %14 : vector<8x32xf32>
    %48 = arith.mulf %35, %41 : vector<8x32xf32>
    %49 = arith.addf %47, %48 : vector<8x32xf32>
    %50 = math.tanh %49 : vector<8x32xf32>
    %51 = arith.mulf %46, %50 : vector<8x32xf32>
    %c0_34 = arith.constant 0 : index
    %c0_35 = arith.constant 0 : index
    %52 = vector.load %arg9[%c0_34, %c0_35] : memref<64x32xf32, #tpu.memory_space<vmem>>, vector<8x32xf32>
    tpu.vector_store %arg9[%c0_34, %c0_35], %51 {strides = array<i32>} : memref<64x32xf32, #tpu.memory_space<vmem>>, vector<8x32xf32>,
    %c0_36 = arith.constant 0 : index
    %c8 = arith.constant 8 : index
    %c0_37 = arith.constant 0 : index
    %53 = vector.load %arg8[%c0_36, %c8, %c0_37] : memref<4x64x32xf32, #tpu.memory_space<vmem>>, vector<1x8x32xf32>
    %54 = vector.shape_cast %53 : vector<1x8x32xf32> to vector<8x32xf32>
    %cst_38 = arith.constant dense<0.000000e+00> : vector<8x32xf32>
    %55 = tpu.matmul %51, %7, %cst_38 {dimension_numbers = #tpu.dot_dimension_numbers<[1], [0], [0], [1], [0, 0, 1, 1], [], []>} : vector<8x32xf32>, vector<32x32xf32>, vector<8x32xf32> -> vector<8x32xf32>
    %56 = arith.addf %54, %55 : vector<8x32xf32>
    %c1_39 = arith.constant 1 : index
    %c8_40 = arith.constant 8 : index
    %c0_41 = arith.constant 0 : index
    %57 = vector.load %arg8[%c1_39, %c8_40, %c0_41] : memref<4x64x32xf32, #tpu.memory_space<vmem>>, vector<1x8x32xf32>
    %58 = vector.shape_cast %57 : vector<1x8x32xf32> to vector<8x32xf32>
    %cst_42 = arith.constant dense<0.000000e+00> : vector<8x32xf32>
    %59 = tpu.matmul %51, %9, %cst_42 {dimension_numbers = #tpu.dot_dimension_numbers<[1], [0], [0], [1], [0, 0, 1, 1], [], []>} : vector<8x32xf32>, vector<32x32xf32>, vector<8x32xf32> -> vector<8x32xf32>
    %60 = arith.addf %58, %59 : vector<8x32xf32>
    %c2_43 = arith.constant 2 : index
    %c8_44 = arith.constant 8 : index
    %c0_45 = arith.constant 0 : index
    %61 = vector.load %arg8[%c2_43, %c8_44, %c0_45] : memref<4x64x32xf32, #tpu.memory_space<vmem>>, vector<1x8x32xf32>
    %62 = vector.shape_cast %61 : vector<1x8x32xf32> to vector<8x32xf32>
    %cst_46 = arith.constant dense<0.000000e+00> : vector<8x32xf32>
    %63 = tpu.matmul %51, %11, %cst_46 {dimension_numbers = #tpu.dot_dimension_numbers<[1], [0], [0], [1], [0, 0, 1, 1], [], []>} : vector<8x32xf32>, vector<32x32xf32>, vector<8x32xf32> -> vector<8x32xf32>
    %64 = arith.addf %62, %63 : vector<8x32xf32>
    %c3_47 = arith.constant 3 : index
    %c8_48 = arith.constant 8 : index
    %c0_49 = arith.constant 0 : index
    %65 = vector.load %arg8[%c3_47, %c8_48, %c0_49] : memref<4x64x32xf32, #tpu.memory_space<vmem>>, vector<1x8x32xf32>
    %66 = vector.shape_cast %65 : vector<1x8x32xf32> to vector<8x32xf32>
    %cst_50 = arith.constant dense<0.000000e+00> : vector<8x32xf32>
    %67 = tpu.matmul %51, %13, %cst_50 {dimension_numbers = #tpu.dot_dimension_numbers<[1], [0], [0], [1], [0, 0, 1, 1], [], []>} : vector<8x32xf32>, vector<32x32xf32>, vector<8x32xf32> -> vector<8x32xf32>
    %68 = arith.addf %66, %67 : vector<8x32xf32>
    %69 = arith.negf %56 : vector<8x32xf32>
    %70 = math.exp %69 : vector<8x32xf32>
    %cst_51 = arith.constant 1.000000e+00 : f32
    %71 = vector.broadcast %cst_51 : f32 to vector<8x32xf32>
    %72 = arith.addf %71, %70 : vector<8x32xf32>
    %73 = arith.divf %71, %72 : vector<8x32xf32>
    %74 = arith.negf %60 : vector<8x32xf32>
    %75 = math.exp %74 : vector<8x32xf32>
    %cst_52 = arith.constant 1.000000e+00 : f32
    %76 = vector.broadcast %cst_52 : f32 to vector<8x32xf32>
    %77 = arith.addf %76, %75 : vector<8x32xf32>
    %78 = arith.divf %76, %77 : vector<8x32xf32>
    %79 = math.tanh %64 : vector<8x32xf32>
    %80 = arith.negf %68 : vector<8x32xf32>
    %81 = math.exp %80 : vector<8x32xf32>
    %cst_53 = arith.constant 1.000000e+00 : f32
    %82 = vector.broadcast %cst_53 : f32 to vector<8x32xf32>
    %83 = arith.addf %82, %81 : vector<8x32xf32>
    %84 = arith.divf %82, %83 : vector<8x32xf32>
    %85 = arith.mulf %78, %49 : vector<8x32xf32>
    %86 = arith.mulf %73, %79 : vector<8x32xf32>
    %87 = arith.addf %85, %86 : vector<8x32xf32>
    %88 = math.tanh %87 : vector<8x32xf32>
    %89 = arith.mulf %84, %88 : vector<8x32xf32>
    %c8_54 = arith.constant 8 : index
    %c0_55 = arith.constant 0 : index
    %90 = vector.load %arg9[%c8_54, %c0_55] : memref<64x32xf32, #tpu.memory_space<vmem>>, vector<8x32xf32>
    tpu.vector_store %arg9[%c8_54, %c0_55], %89 {strides = array<i32>} : memref<64x32xf32, #tpu.memory_space<vmem>>, vector<8x32xf32>,
    %c0_56 = arith.constant 0 : index
    %c16 = arith.constant 16 : index
    %c0_57 = arith.constant 0 : index
    %91 = vector.load %arg8[%c0_56, %c16, %c0_57] : memref<4x64x32xf32, #tpu.memory_space<vmem>>, vector<1x8x32xf32>
    %92 = vector.shape_cast %91 : vector<1x8x32xf32> to vector<8x32xf32>
    %cst_58 = arith.constant dense<0.000000e+00> : vector<8x32xf32>
    %93 = tpu.matmul %89, %7, %cst_58 {dimension_numbers = #tpu.dot_dimension_numbers<[1], [0], [0], [1], [0, 0, 1, 1], [], []>} : vector<8x32xf32>, vector<32x32xf32>, vector<8x32xf32> -> vector<8x32xf32>
    %94 = arith.addf %92, %93 : vector<8x32xf32>
    %c1_59 = arith.constant 1 : index
    %c16_60 = arith.constant 16 : index
    %c0_61 = arith.constant 0 : index
    %95 = vector.load %arg8[%c1_59, %c16_60, %c0_61] : memref<4x64x32xf32, #tpu.memory_space<vmem>>, vector<1x8x32xf32>
    %96 = vector.shape_cast %95 : vector<1x8x32xf32> to vector<8x32xf32>
    %cst_62 = arith.constant dense<0.000000e+00> : vector<8x32xf32>
    %97 = tpu.matmul %89, %9, %cst_62 {dimension_numbers = #tpu.dot_dimension_numbers<[1], [0], [0], [1], [0, 0, 1, 1], [], []>} : vector<8x32xf32>, vector<32x32xf32>, vector<8x32xf32> -> vector<8x32xf32>
    %98 = arith.addf %96, %97 : vector<8x32xf32>
    %c2_63 = arith.constant 2 : index
    %c16_64 = arith.constant 16 : index
    %c0_65 = arith.constant 0 : index
    %99 = vector.load %arg8[%c2_63, %c16_64, %c0_65] : memref<4x64x32xf32, #tpu.memory_space<vmem>>, vector<1x8x32xf32>
    %100 = vector.shape_cast %99 : vector<1x8x32xf32> to vector<8x32xf32>
    %cst_66 = arith.constant dense<0.000000e+00> : vector<8x32xf32>
    %101 = tpu.matmul %89, %11, %cst_66 {dimension_numbers = #tpu.dot_dimension_numbers<[1], [0], [0], [1], [0, 0, 1, 1], [], []>} : vector<8x32xf32>, vector<32x32xf32>, vector<8x32xf32> -> vector<8x32xf32>
    %102 = arith.addf %100, %101 : vector<8x32xf32>
    %c3_67 = arith.constant 3 : index
    %c16_68 = arith.constant 16 : index
    %c0_69 = arith.constant 0 : index
    %103 = vector.load %arg8[%c3_67, %c16_68, %c0_69] : memref<4x64x32xf32, #tpu.memory_space<vmem>>, vector<1x8x32xf32>
    %104 = vector.shape_cast %103 : vector<1x8x32xf32> to vector<8x32xf32>
    %cst_70 = arith.constant dense<0.000000e+00> : vector<8x32xf32>
    %105 = tpu.matmul %89, %13, %cst_70 {dimension_numbers = #tpu.dot_dimension_numbers<[1], [0], [0], [1], [0, 0, 1, 1], [], []>} : vector<8x32xf32>, vector<32x32xf32>, vector<8x32xf32> -> vector<8x32xf32>
    %106 = arith.addf %104, %105 : vector<8x32xf32>
    %107 = arith.negf %94 : vector<8x32xf32>
    %108 = math.exp %107 : vector<8x32xf32>
    %cst_71 = arith.constant 1.000000e+00 : f32
    %109 = vector.broadcast %cst_71 : f32 to vector<8x32xf32>
    %110 = arith.addf %109, %108 : vector<8x32xf32>
    %111 = arith.divf %109, %110 : vector<8x32xf32>
    %112 = arith.negf %98 : vector<8x32xf32>
    %113 = math.exp %112 : vector<8x32xf32>
    %cst_72 = arith.constant 1.000000e+00 : f32
    %114 = vector.broadcast %cst_72 : f32 to vector<8x32xf32>
    %115 = arith.addf %114, %113 : vector<8x32xf32>
    %116 = arith.divf %114, %115 : vector<8x32xf32>
    %117 = math.tanh %102 : vector<8x32xf32>
    %118 = arith.negf %106 : vector<8x32xf32>
    %119 = math.exp %118 : vector<8x32xf32>
    %cst_73 = arith.constant 1.000000e+00 : f32
    %120 = vector.broadcast %cst_73 : f32 to vector<8x32xf32>
    %121 = arith.addf %120, %119 : vector<8x32xf32>
    %122 = arith.divf %120, %121 : vector<8x32xf32>
    %123 = arith.mulf %116, %87 : vector<8x32xf32>
    %124 = arith.mulf %111, %117 : vector<8x32xf32>
    %125 = arith.addf %123, %124 : vector<8x32xf32>
    %126 = math.tanh %125 : vector<8x32xf32>
    %127 = arith.mulf %122, %126 : vector<8x32xf32>
    %c16_74 = arith.constant 16 : index
    %c0_75 = arith.constant 0 : index
    %128 = vector.load %arg9[%c16_74, %c0_75] : memref<64x32xf32, #tpu.memory_space<vmem>>, vector<8x32xf32>
    tpu.vector_store %arg9[%c16_74, %c0_75], %127 {strides = array<i32>} : memref<64x32xf32, #tpu.memory_space<vmem>>, vector<8x32xf32>,
    %c0_76 = arith.constant 0 : index
    %c24 = arith.constant 24 : index
    %c0_77 = arith.constant 0 : index
    %129 = vector.load %arg8[%c0_76, %c24, %c0_77] : memref<4x64x32xf32, #tpu.memory_space<vmem>>, vector<1x8x32xf32>
    %130 = vector.shape_cast %129 : vector<1x8x32xf32> to vector<8x32xf32>
    %cst_78 = arith.constant dense<0.000000e+00> : vector<8x32xf32>
    %131 = tpu.matmul %127, %7, %cst_78 {dimension_numbers = #tpu.dot_dimension_numbers<[1], [0], [0], [1], [0, 0, 1, 1], [], []>} : vector<8x32xf32>, vector<32x32xf32>, vector<8x32xf32> -> vector<8x32xf32>
    %132 = arith.addf %130, %131 : vector<8x32xf32>
    %c1_79 = arith.constant 1 : index
    %c24_80 = arith.constant 24 : index
    %c0_81 = arith.constant 0 : index
    %133 = vector.load %arg8[%c1_79, %c24_80, %c0_81] : memref<4x64x32xf32, #tpu.memory_space<vmem>>, vector<1x8x32xf32>
    %134 = vector.shape_cast %133 : vector<1x8x32xf32> to vector<8x32xf32>
    %cst_82 = arith.constant dense<0.000000e+00> : vector<8x32xf32>
    %135 = tpu.matmul %127, %9, %cst_82 {dimension_numbers = #tpu.dot_dimension_numbers<[1], [0], [0], [1], [0, 0, 1, 1], [], []>} : vector<8x32xf32>, vector<32x32xf32>, vector<8x32xf32> -> vector<8x32xf32>
    %136 = arith.addf %134, %135 : vector<8x32xf32>
    %c2_83 = arith.constant 2 : index
    %c24_84 = arith.constant 24 : index
    %c0_85 = arith.constant 0 : index
    %137 = vector.load %arg8[%c2_83, %c24_84, %c0_85] : memref<4x64x32xf32, #tpu.memory_space<vmem>>, vector<1x8x32xf32>
    %138 = vector.shape_cast %137 : vector<1x8x32xf32> to vector<8x32xf32>
    %cst_86 = arith.constant dense<0.000000e+00> : vector<8x32xf32>
    %139 = tpu.matmul %127, %11, %cst_86 {dimension_numbers = #tpu.dot_dimension_numbers<[1], [0], [0], [1], [0, 0, 1, 1], [], []>} : vector<8x32xf32>, vector<32x32xf32>, vector<8x32xf32> -> vector<8x32xf32>
    %140 = arith.addf %138, %139 : vector<8x32xf32>
    %c3_87 = arith.constant 3 : index
    %c24_88 = arith.constant 24 : index
    %c0_89 = arith.constant 0 : index
    %141 = vector.load %arg8[%c3_87, %c24_88, %c0_89] : memref<4x64x32xf32, #tpu.memory_space<vmem>>, vector<1x8x32xf32>
    %142 = vector.shape_cast %141 : vector<1x8x32xf32> to vector<8x32xf32>
    %cst_90 = arith.constant dense<0.000000e+00> : vector<8x32xf32>
    %143 = tpu.matmul %127, %13, %cst_90 {dimension_numbers = #tpu.dot_dimension_numbers<[1], [0], [0], [1], [0, 0, 1, 1], [], []>} : vector<8x32xf32>, vector<32x32xf32>, vector<8x32xf32> -> vector<8x32xf32>
    %144 = arith.addf %142, %143 : vector<8x32xf32>
    %145 = arith.negf %132 : vector<8x32xf32>
    %146 = math.exp %145 : vector<8x32xf32>
    %cst_91 = arith.constant 1.000000e+00 : f32
    %147 = vector.broadcast %cst_91 : f32 to vector<8x32xf32>
    %148 = arith.addf %147, %146 : vector<8x32xf32>
    %149 = arith.divf %147, %148 : vector<8x32xf32>
    %150 = arith.negf %136 : vector<8x32xf32>
    %151 = math.exp %150 : vector<8x32xf32>
    %cst_92 = arith.constant 1.000000e+00 : f32
    %152 = vector.broadcast %cst_92 : f32 to vector<8x32xf32>
    %153 = arith.addf %152, %151 : vector<8x32xf32>
    %154 = arith.divf %152, %153 : vector<8x32xf32>
    %155 = math.tanh %140 : vector<8x32xf32>
    %156 = arith.negf %144 : vector<8x32xf32>
    %157 = math.exp %156 : vector<8x32xf32>
    %cst_93 = arith.constant 1.000000e+00 : f32
    %158 = vector.broadcast %cst_93 : f32 to vector<8x32xf32>
    %159 = arith.addf %158, %157 : vector<8x32xf32>
    %160 = arith.divf %158, %159 : vector<8x32xf32>
    %161 = arith.mulf %154, %125 : vector<8x32xf32>
    %162 = arith.mulf %149, %155 : vector<8x32xf32>
    %163 = arith.addf %161, %162 : vector<8x32xf32>
    %164 = math.tanh %163 : vector<8x32xf32>
    %165 = arith.mulf %160, %164 : vector<8x32xf32>
    %c24_94 = arith.constant 24 : index
    %c0_95 = arith.constant 0 : index
    %166 = vector.load %arg9[%c24_94, %c0_95] : memref<64x32xf32, #tpu.memory_space<vmem>>, vector<8x32xf32>
    tpu.vector_store %arg9[%c24_94, %c0_95], %165 {strides = array<i32>} : memref<64x32xf32, #tpu.memory_space<vmem>>, vector<8x32xf32>,
    %c0_96 = arith.constant 0 : index
    %c32 = arith.constant 32 : index
    %c0_97 = arith.constant 0 : index
    %167 = vector.load %arg8[%c0_96, %c32, %c0_97] : memref<4x64x32xf32, #tpu.memory_space<vmem>>, vector<1x8x32xf32>
    %168 = vector.shape_cast %167 : vector<1x8x32xf32> to vector<8x32xf32>
    %cst_98 = arith.constant dense<0.000000e+00> : vector<8x32xf32>
    %169 = tpu.matmul %165, %7, %cst_98 {dimension_numbers = #tpu.dot_dimension_numbers<[1], [0], [0], [1], [0, 0, 1, 1], [], []>} : vector<8x32xf32>, vector<32x32xf32>, vector<8x32xf32> -> vector<8x32xf32>
    %170 = arith.addf %168, %169 : vector<8x32xf32>
    %c1_99 = arith.constant 1 : index
    %c32_100 = arith.constant 32 : index
    %c0_101 = arith.constant 0 : index
    %171 = vector.load %arg8[%c1_99, %c32_100, %c0_101] : memref<4x64x32xf32, #tpu.memory_space<vmem>>, vector<1x8x32xf32>
    %172 = vector.shape_cast %171 : vector<1x8x32xf32> to vector<8x32xf32>
    %cst_102 = arith.constant dense<0.000000e+00> : vector<8x32xf32>
    %173 = tpu.matmul %165, %9, %cst_102 {dimension_numbers = #tpu.dot_dimension_numbers<[1], [0], [0], [1], [0, 0, 1, 1], [], []>} : vector<8x32xf32>, vector<32x32xf32>, vector<8x32xf32> -> vector<8x32xf32>
    %174 = arith.addf %172, %173 : vector<8x32xf32>
    %c2_103 = arith.constant 2 : index
    %c32_104 = arith.constant 32 : index
    %c0_105 = arith.constant 0 : index
    %175 = vector.load %arg8[%c2_103, %c32_104, %c0_105] : memref<4x64x32xf32, #tpu.memory_space<vmem>>, vector<1x8x32xf32>
    %176 = vector.shape_cast %175 : vector<1x8x32xf32> to vector<8x32xf32>
    %cst_106 = arith.constant dense<0.000000e+00> : vector<8x32xf32>
    %177 = tpu.matmul %165, %11, %cst_106 {dimension_numbers = #tpu.dot_dimension_numbers<[1], [0], [0], [1], [0, 0, 1, 1], [], []>} : vector<8x32xf32>, vector<32x32xf32>, vector<8x32xf32> -> vector<8x32xf32>
    %178 = arith.addf %176, %177 : vector<8x32xf32>
    %c3_107 = arith.constant 3 : index
    %c32_108 = arith.constant 32 : index
    %c0_109 = arith.constant 0 : index
    %179 = vector.load %arg8[%c3_107, %c32_108, %c0_109] : memref<4x64x32xf32, #tpu.memory_space<vmem>>, vector<1x8x32xf32>
    %180 = vector.shape_cast %179 : vector<1x8x32xf32> to vector<8x32xf32>
    %cst_110 = arith.constant dense<0.000000e+00> : vector<8x32xf32>
    %181 = tpu.matmul %165, %13, %cst_110 {dimension_numbers = #tpu.dot_dimension_numbers<[1], [0], [0], [1], [0, 0, 1, 1], [], []>} : vector<8x32xf32>, vector<32x32xf32>, vector<8x32xf32> -> vector<8x32xf32>
    %182 = arith.addf %180, %181 : vector<8x32xf32>
    %183 = arith.negf %170 : vector<8x32xf32>
    %184 = math.exp %183 : vector<8x32xf32>
    %cst_111 = arith.constant 1.000000e+00 : f32
    %185 = vector.broadcast %cst_111 : f32 to vector<8x32xf32>
    %186 = arith.addf %185, %184 : vector<8x32xf32>
    %187 = arith.divf %185, %186 : vector<8x32xf32>
    %188 = arith.negf %174 : vector<8x32xf32>
    %189 = math.exp %188 : vector<8x32xf32>
    %cst_112 = arith.constant 1.000000e+00 : f32
    %190 = vector.broadcast %cst_112 : f32 to vector<8x32xf32>
    %191 = arith.addf %190, %189 : vector<8x32xf32>
    %192 = arith.divf %190, %191 : vector<8x32xf32>
    %193 = math.tanh %178 : vector<8x32xf32>
    %194 = arith.negf %182 : vector<8x32xf32>
    %195 = math.exp %194 : vector<8x32xf32>
    %cst_113 = arith.constant 1.000000e+00 : f32
    %196 = vector.broadcast %cst_113 : f32 to vector<8x32xf32>
    %197 = arith.addf %196, %195 : vector<8x32xf32>
    %198 = arith.divf %196, %197 : vector<8x32xf32>
    %199 = arith.mulf %192, %163 : vector<8x32xf32>
    %200 = arith.mulf %187, %193 : vector<8x32xf32>
    %201 = arith.addf %199, %200 : vector<8x32xf32>
    %202 = math.tanh %201 : vector<8x32xf32>
    %203 = arith.mulf %198, %202 : vector<8x32xf32>
    %c32_114 = arith.constant 32 : index
    %c0_115 = arith.constant 0 : index
    %204 = vector.load %arg9[%c32_114, %c0_115] : memref<64x32xf32, #tpu.memory_space<vmem>>, vector<8x32xf32>
    tpu.vector_store %arg9[%c32_114, %c0_115], %203 {strides = array<i32>} : memref<64x32xf32, #tpu.memory_space<vmem>>, vector<8x32xf32>,
    %c0_116 = arith.constant 0 : index
    %c40 = arith.constant 40 : index
    %c0_117 = arith.constant 0 : index
    %205 = vector.load %arg8[%c0_116, %c40, %c0_117] : memref<4x64x32xf32, #tpu.memory_space<vmem>>, vector<1x8x32xf32>
    %206 = vector.shape_cast %205 : vector<1x8x32xf32> to vector<8x32xf32>
    %cst_118 = arith.constant dense<0.000000e+00> : vector<8x32xf32>
    %207 = tpu.matmul %203, %7, %cst_118 {dimension_numbers = #tpu.dot_dimension_numbers<[1], [0], [0], [1], [0, 0, 1, 1], [], []>} : vector<8x32xf32>, vector<32x32xf32>, vector<8x32xf32> -> vector<8x32xf32>
    %208 = arith.addf %206, %207 : vector<8x32xf32>
    %c1_119 = arith.constant 1 : index
    %c40_120 = arith.constant 40 : index
    %c0_121 = arith.constant 0 : index
    %209 = vector.load %arg8[%c1_119, %c40_120, %c0_121] : memref<4x64x32xf32, #tpu.memory_space<vmem>>, vector<1x8x32xf32>
    %210 = vector.shape_cast %209 : vector<1x8x32xf32> to vector<8x32xf32>
    %cst_122 = arith.constant dense<0.000000e+00> : vector<8x32xf32>
    %211 = tpu.matmul %203, %9, %cst_122 {dimension_numbers = #tpu.dot_dimension_numbers<[1], [0], [0], [1], [0, 0, 1, 1], [], []>} : vector<8x32xf32>, vector<32x32xf32>, vector<8x32xf32> -> vector<8x32xf32>
    %212 = arith.addf %210, %211 : vector<8x32xf32>
    %c2_123 = arith.constant 2 : index
    %c40_124 = arith.constant 40 : index
    %c0_125 = arith.constant 0 : index
    %213 = vector.load %arg8[%c2_123, %c40_124, %c0_125] : memref<4x64x32xf32, #tpu.memory_space<vmem>>, vector<1x8x32xf32>
    %214 = vector.shape_cast %213 : vector<1x8x32xf32> to vector<8x32xf32>
    %cst_126 = arith.constant dense<0.000000e+00> : vector<8x32xf32>
    %215 = tpu.matmul %203, %11, %cst_126 {dimension_numbers = #tpu.dot_dimension_numbers<[1], [0], [0], [1], [0, 0, 1, 1], [], []>} : vector<8x32xf32>, vector<32x32xf32>, vector<8x32xf32> -> vector<8x32xf32>
    %216 = arith.addf %214, %215 : vector<8x32xf32>
    %c3_127 = arith.constant 3 : index
    %c40_128 = arith.constant 40 : index
    %c0_129 = arith.constant 0 : index
    %217 = vector.load %arg8[%c3_127, %c40_128, %c0_129] : memref<4x64x32xf32, #tpu.memory_space<vmem>>, vector<1x8x32xf32>
    %218 = vector.shape_cast %217 : vector<1x8x32xf32> to vector<8x32xf32>
    %cst_130 = arith.constant dense<0.000000e+00> : vector<8x32xf32>
    %219 = tpu.matmul %203, %13, %cst_130 {dimension_numbers = #tpu.dot_dimension_numbers<[1], [0], [0], [1], [0, 0, 1, 1], [], []>} : vector<8x32xf32>, vector<32x32xf32>, vector<8x32xf32> -> vector<8x32xf32>
    %220 = arith.addf %218, %219 : vector<8x32xf32>
    %221 = arith.negf %208 : vector<8x32xf32>
    %222 = math.exp %221 : vector<8x32xf32>
    %cst_131 = arith.constant 1.000000e+00 : f32
    %223 = vector.broadcast %cst_131 : f32 to vector<8x32xf32>
    %224 = arith.addf %223, %222 : vector<8x32xf32>
    %225 = arith.divf %223, %224 : vector<8x32xf32>
    %226 = arith.negf %212 : vector<8x32xf32>
    %227 = math.exp %226 : vector<8x32xf32>
    %cst_132 = arith.constant 1.000000e+00 : f32
    %228 = vector.broadcast %cst_132 : f32 to vector<8x32xf32>
    %229 = arith.addf %228, %227 : vector<8x32xf32>
    %230 = arith.divf %228, %229 : vector<8x32xf32>
    %231 = math.tanh %216 : vector<8x32xf32>
    %232 = arith.negf %220 : vector<8x32xf32>
    %233 = math.exp %232 : vector<8x32xf32>
    %cst_133 = arith.constant 1.000000e+00 : f32
    %234 = vector.broadcast %cst_133 : f32 to vector<8x32xf32>
    %235 = arith.addf %234, %233 : vector<8x32xf32>
    %236 = arith.divf %234, %235 : vector<8x32xf32>
    %237 = arith.mulf %230, %201 : vector<8x32xf32>
    %238 = arith.mulf %225, %231 : vector<8x32xf32>
    %239 = arith.addf %237, %238 : vector<8x32xf32>
    %240 = math.tanh %239 : vector<8x32xf32>
    %241 = arith.mulf %236, %240 : vector<8x32xf32>
    %c40_134 = arith.constant 40 : index
    %c0_135 = arith.constant 0 : index
    %242 = vector.load %arg9[%c40_134, %c0_135] : memref<64x32xf32, #tpu.memory_space<vmem>>, vector<8x32xf32>
    tpu.vector_store %arg9[%c40_134, %c0_135], %241 {strides = array<i32>} : memref<64x32xf32, #tpu.memory_space<vmem>>, vector<8x32xf32>,
    %c0_136 = arith.constant 0 : index
    %c48 = arith.constant 48 : index
    %c0_137 = arith.constant 0 : index
    %243 = vector.load %arg8[%c0_136, %c48, %c0_137] : memref<4x64x32xf32, #tpu.memory_space<vmem>>, vector<1x8x32xf32>
    %244 = vector.shape_cast %243 : vector<1x8x32xf32> to vector<8x32xf32>
    %cst_138 = arith.constant dense<0.000000e+00> : vector<8x32xf32>
    %245 = tpu.matmul %241, %7, %cst_138 {dimension_numbers = #tpu.dot_dimension_numbers<[1], [0], [0], [1], [0, 0, 1, 1], [], []>} : vector<8x32xf32>, vector<32x32xf32>, vector<8x32xf32> -> vector<8x32xf32>
    %246 = arith.addf %244, %245 : vector<8x32xf32>
    %c1_139 = arith.constant 1 : index
    %c48_140 = arith.constant 48 : index
    %c0_141 = arith.constant 0 : index
    %247 = vector.load %arg8[%c1_139, %c48_140, %c0_141] : memref<4x64x32xf32, #tpu.memory_space<vmem>>, vector<1x8x32xf32>
    %248 = vector.shape_cast %247 : vector<1x8x32xf32> to vector<8x32xf32>
    %cst_142 = arith.constant dense<0.000000e+00> : vector<8x32xf32>
    %249 = tpu.matmul %241, %9, %cst_142 {dimension_numbers = #tpu.dot_dimension_numbers<[1], [0], [0], [1], [0, 0, 1, 1], [], []>} : vector<8x32xf32>, vector<32x32xf32>, vector<8x32xf32> -> vector<8x32xf32>
    %250 = arith.addf %248, %249 : vector<8x32xf32>
    %c2_143 = arith.constant 2 : index
    %c48_144 = arith.constant 48 : index
    %c0_145 = arith.constant 0 : index
    %251 = vector.load %arg8[%c2_143, %c48_144, %c0_145] : memref<4x64x32xf32, #tpu.memory_space<vmem>>, vector<1x8x32xf32>
    %252 = vector.shape_cast %251 : vector<1x8x32xf32> to vector<8x32xf32>
    %cst_146 = arith.constant dense<0.000000e+00> : vector<8x32xf32>
    %253 = tpu.matmul %241, %11, %cst_146 {dimension_numbers = #tpu.dot_dimension_numbers<[1], [0], [0], [1], [0, 0, 1, 1], [], []>} : vector<8x32xf32>, vector<32x32xf32>, vector<8x32xf32> -> vector<8x32xf32>
    %254 = arith.addf %252, %253 : vector<8x32xf32>
    %c3_147 = arith.constant 3 : index
    %c48_148 = arith.constant 48 : index
    %c0_149 = arith.constant 0 : index
    %255 = vector.load %arg8[%c3_147, %c48_148, %c0_149] : memref<4x64x32xf32, #tpu.memory_space<vmem>>, vector<1x8x32xf32>
    %256 = vector.shape_cast %255 : vector<1x8x32xf32> to vector<8x32xf32>
    %cst_150 = arith.constant dense<0.000000e+00> : vector<8x32xf32>
    %257 = tpu.matmul %241, %13, %cst_150 {dimension_numbers = #tpu.dot_dimension_numbers<[1], [0], [0], [1], [0, 0, 1, 1], [], []>} : vector<8x32xf32>, vector<32x32xf32>, vector<8x32xf32> -> vector<8x32xf32>
    %258 = arith.addf %256, %257 : vector<8x32xf32>
    %259 = arith.negf %246 : vector<8x32xf32>
    %260 = math.exp %259 : vector<8x32xf32>
    %cst_151 = arith.constant 1.000000e+00 : f32
    %261 = vector.broadcast %cst_151 : f32 to vector<8x32xf32>
    %262 = arith.addf %261, %260 : vector<8x32xf32>
    %263 = arith.divf %261, %262 : vector<8x32xf32>
    %264 = arith.negf %250 : vector<8x32xf32>
    %265 = math.exp %264 : vector<8x32xf32>
    %cst_152 = arith.constant 1.000000e+00 : f32
    %266 = vector.broadcast %cst_152 : f32 to vector<8x32xf32>
    %267 = arith.addf %266, %265 : vector<8x32xf32>
    %268 = arith.divf %266, %267 : vector<8x32xf32>
    %269 = math.tanh %254 : vector<8x32xf32>
    %270 = arith.negf %258 : vector<8x32xf32>
    %271 = math.exp %270 : vector<8x32xf32>
    %cst_153 = arith.constant 1.000000e+00 : f32
    %272 = vector.broadcast %cst_153 : f32 to vector<8x32xf32>
    %273 = arith.addf %272, %271 : vector<8x32xf32>
    %274 = arith.divf %272, %273 : vector<8x32xf32>
    %275 = arith.mulf %268, %239 : vector<8x32xf32>
    %276 = arith.mulf %263, %269 : vector<8x32xf32>
    %277 = arith.addf %275, %276 : vector<8x32xf32>
    %278 = math.tanh %277 : vector<8x32xf32>
    %279 = arith.mulf %274, %278 : vector<8x32xf32>
    %c48_154 = arith.constant 48 : index
    %c0_155 = arith.constant 0 : index
    %280 = vector.load %arg9[%c48_154, %c0_155] : memref<64x32xf32, #tpu.memory_space<vmem>>, vector<8x32xf32>
    tpu.vector_store %arg9[%c48_154, %c0_155], %279 {strides = array<i32>} : memref<64x32xf32, #tpu.memory_space<vmem>>, vector<8x32xf32>,
    %c0_156 = arith.constant 0 : index
    %c56 = arith.constant 56 : index
    %c0_157 = arith.constant 0 : index
    %281 = vector.load %arg8[%c0_156, %c56, %c0_157] : memref<4x64x32xf32, #tpu.memory_space<vmem>>, vector<1x8x32xf32>
    %282 = vector.shape_cast %281 : vector<1x8x32xf32> to vector<8x32xf32>
    %cst_158 = arith.constant dense<0.000000e+00> : vector<8x32xf32>
    %283 = tpu.matmul %279, %7, %cst_158 {dimension_numbers = #tpu.dot_dimension_numbers<[1], [0], [0], [1], [0, 0, 1, 1], [], []>} : vector<8x32xf32>, vector<32x32xf32>, vector<8x32xf32> -> vector<8x32xf32>
    %284 = arith.addf %282, %283 : vector<8x32xf32>
    %c1_159 = arith.constant 1 : index
    %c56_160 = arith.constant 56 : index
    %c0_161 = arith.constant 0 : index
    %285 = vector.load %arg8[%c1_159, %c56_160, %c0_161] : memref<4x64x32xf32, #tpu.memory_space<vmem>>, vector<1x8x32xf32>
    %286 = vector.shape_cast %285 : vector<1x8x32xf32> to vector<8x32xf32>
    %cst_162 = arith.constant dense<0.000000e+00> : vector<8x32xf32>
    %287 = tpu.matmul %279, %9, %cst_162 {dimension_numbers = #tpu.dot_dimension_numbers<[1], [0], [0], [1], [0, 0, 1, 1], [], []>} : vector<8x32xf32>, vector<32x32xf32>, vector<8x32xf32> -> vector<8x32xf32>
    %288 = arith.addf %286, %287 : vector<8x32xf32>
    %c2_163 = arith.constant 2 : index
    %c56_164 = arith.constant 56 : index
    %c0_165 = arith.constant 0 : index
    %289 = vector.load %arg8[%c2_163, %c56_164, %c0_165] : memref<4x64x32xf32, #tpu.memory_space<vmem>>, vector<1x8x32xf32>
    %290 = vector.shape_cast %289 : vector<1x8x32xf32> to vector<8x32xf32>
    %cst_166 = arith.constant dense<0.000000e+00> : vector<8x32xf32>
    %291 = tpu.matmul %279, %11, %cst_166 {dimension_numbers = #tpu.dot_dimension_numbers<[1], [0], [0], [1], [0, 0, 1, 1], [], []>} : vector<8x32xf32>, vector<32x32xf32>, vector<8x32xf32> -> vector<8x32xf32>
    %292 = arith.addf %290, %291 : vector<8x32xf32>
    %c3_167 = arith.constant 3 : index
    %c56_168 = arith.constant 56 : index
    %c0_169 = arith.constant 0 : index
    %293 = vector.load %arg8[%c3_167, %c56_168, %c0_169] : memref<4x64x32xf32, #tpu.memory_space<vmem>>, vector<1x8x32xf32>
    %294 = vector.shape_cast %293 : vector<1x8x32xf32> to vector<8x32xf32>
    %cst_170 = arith.constant dense<0.000000e+00> : vector<8x32xf32>
    %295 = tpu.matmul %279, %13, %cst_170 {dimension_numbers = #tpu.dot_dimension_numbers<[1], [0], [0], [1], [0, 0, 1, 1], [], []>} : vector<8x32xf32>, vector<32x32xf32>, vector<8x32xf32> -> vector<8x32xf32>
    %296 = arith.addf %294, %295 : vector<8x32xf32>
    %297 = arith.negf %284 : vector<8x32xf32>
    %298 = math.exp %297 : vector<8x32xf32>
    %cst_171 = arith.constant 1.000000e+00 : f32
    %299 = vector.broadcast %cst_171 : f32 to vector<8x32xf32>
    %300 = arith.addf %299, %298 : vector<8x32xf32>
    %301 = arith.divf %299, %300 : vector<8x32xf32>
    %302 = arith.negf %288 : vector<8x32xf32>
    %303 = math.exp %302 : vector<8x32xf32>
    %cst_172 = arith.constant 1.000000e+00 : f32
    %304 = vector.broadcast %cst_172 : f32 to vector<8x32xf32>
    %305 = arith.addf %304, %303 : vector<8x32xf32>
    %306 = arith.divf %304, %305 : vector<8x32xf32>
    %307 = math.tanh %292 : vector<8x32xf32>
    %308 = arith.negf %296 : vector<8x32xf32>
    %309 = math.exp %308 : vector<8x32xf32>
    %cst_173 = arith.constant 1.000000e+00 : f32
    %310 = vector.broadcast %cst_173 : f32 to vector<8x32xf32>
    %311 = arith.addf %310, %309 : vector<8x32xf32>
    %312 = arith.divf %310, %311 : vector<8x32xf32>
    %313 = arith.mulf %306, %277 : vector<8x32xf32>
    %314 = arith.mulf %301, %307 : vector<8x32xf32>
    %315 = arith.addf %313, %314 : vector<8x32xf32>
    %316 = math.tanh %315 : vector<8x32xf32>
    %317 = arith.mulf %312, %316 : vector<8x32xf32>
    %c56_174 = arith.constant 56 : index
    %c0_175 = arith.constant 0 : index
    %318 = vector.load %arg9[%c56_174, %c0_175] : memref<64x32xf32, #tpu.memory_space<vmem>>, vector<8x32xf32>
    tpu.vector_store %arg9[%c56_174, %c0_175], %317 {strides = array<i32>} : memref<64x32xf32, #tpu.memory_space<vmem>>, vector<8x32xf32>,
    %c1_i32 = arith.constant 1 : i32
    %319 = arith.cmpi eq, %arg0, %c1_i32 : i32
    %320 = arith.extui %319 : i1 to i32
    %c0_i32_176 = arith.constant 0 : i32
    %321 = arith.cmpi ne, %320, %c0_i32_176 : i32
    scf.if %321 {
      %c0_177 = arith.constant 0 : index
      %c0_178 = arith.constant 0 : index
      %322 = vector.load %arg5[%c0_177, %c0_178] : memref<32x128xf32, #tpu.memory_space<vmem>>, vector<32x128xf32>
      %cst_179 = arith.constant dense<0.000000e+00> : vector<8x128xf32>
      %323 = tpu.matmul %317, %322, %cst_179 {dimension_numbers = #tpu.dot_dimension_numbers<[1], [0], [0], [1], [0, 0, 1, 1], [], []>} : vector<8x32xf32>, vector<32x128xf32>, vector<8x128xf32> -> vector<8x128xf32>
      %c0_180 = arith.constant 0 : index
      %c0_181 = arith.constant 0 : index
      %324 = vector.load %arg6[%c0_180, %c0_181] : memref<1x128xf32, #tpu.memory_space<vmem>>, vector<1x128xf32>
      %325 = vector.broadcast %324 : vector<1x128xf32> to vector<8x128xf32>
      %326 = arith.addf %323, %325 : vector<8x128xf32>
      %c0_182 = arith.constant 0 : index
      %c0_183 = arith.constant 0 : index
      %327 = vector.load %arg7[%c0_182, %c0_183] : memref<8x128xf32, #tpu.memory_space<vmem>>, vector<8x128xf32>
      tpu.vector_store %arg7[%c0_182, %c0_183], %326 {strides = array<i32>} : memref<8x128xf32, #tpu.memory_space<vmem>>, vector<8x128xf32>,
    } else {
    }
    return
  }
  func.func @transform_0(%arg0: i32) -> (i32, i32, i32) {
    %c0_i32 = arith.constant 0 : i32
    %c0_i32_0 = arith.constant 0 : i32
    %c0_i32_1 = arith.constant 0 : i32
    %c0_i32_2 = arith.constant 0 : i32
    return %c0_i32, %c0_i32_0, %c0_i32_1 : i32, i32, i32
  }
  func.func @transform_1(%arg0: i32) -> (i32, i32, i32, i32) {
    %c0_i32 = arith.constant 0 : i32
    %c0_i32_0 = arith.constant 0 : i32
    %c0_i32_1 = arith.constant 0 : i32
    %c0_i32_2 = arith.constant 0 : i32
    return %arg0, %c0_i32, %c0_i32_0, %c0_i32_1 : i32, i32, i32, i32
  }
  func.func @transform_2(%arg0: i32) -> (i32, i32, i32, i32) {
    %c0_i32 = arith.constant 0 : i32
    %c0_i32_0 = arith.constant 0 : i32
    %c0_i32_1 = arith.constant 0 : i32
    %c0_i32_2 = arith.constant 0 : i32
    return %arg0, %c0_i32, %c0_i32_0, %c0_i32_1 : i32, i32, i32, i32
  }
  func.func @transform_3(%arg0: i32) -> (i32, i32, i32, i32) {
    %c0_i32 = arith.constant 0 : i32
    %c0_i32_0 = arith.constant 0 : i32
    %c0_i32_1 = arith.constant 0 : i32
    %c0_i32_2 = arith.constant 0 : i32
    return %arg0, %c0_i32, %c0_i32_0, %c0_i32_1 : i32, i32, i32, i32
  }
  func.func @transform_4(%arg0: i32) -> (i32, i32) {
    %c0_i32 = arith.constant 0 : i32
    %c0_i32_0 = arith.constant 0 : i32
    %c0_i32_1 = arith.constant 0 : i32
    return %c0_i32, %c0_i32_0 : i32, i32
  }
  func.func @transform_5(%arg0: i32) -> (i32, i32) {
    %c0_i32 = arith.constant 0 : i32
    %c0_i32_0 = arith.constant 0 : i32
    %c0_i32_1 = arith.constant 0 : i32
    return %c0_i32, %c0_i32_0 : i32, i32
  }
  func.func @transform_6(%arg0: i32) -> (i32, i32) {
    %c0_i32 = arith.constant 0 : i32
    %c0_i32_0 = arith.constant 0 : i32
    %c0_i32_1 = arith.constant 0 : i32
    return %c0_i32, %c0_i32_0 : i32, i32
  }
}

</mosaic_0001>

<bundles_post_ra>
// kernel: tpu_custom_call.1
= control target key start
LH: loop header
LB: loop body
LE: loop exit
PB: predicated region body
PF: predicated region fallthrough
CT: control target
= control target key end

     0   :  { %11 = vsyncpa [#allocation5], 0  ;;  %s5540_s0 = inlined_call_operand.vmem [shape: f32[4,64,32], index: 0, kind: input, shape index: {}]   ;;  %s5541_s1 = inlined_call_operand.vmem [shape: f32[2,4,32,32], index: 1, kind: input, shape index: {}]   ;;  %s5542_s2 = inlined_call_operand.hbm [shape: f32[2,4,32,32], index: 2, kind: input, shape index: {}]   ;;  %s5543_s3 = inlined_call_operand.vmem [shape: f32[2,4,1,32], index: 3, kind: input, shape index: {}]   ;;  %s5544_s4 = inlined_call_operand.vmem [shape: f32[32,128], index: 4, kind: input, shape index: {}]   ;;  %s5545_s5 = inlined_call_operand.vmem [shape: f32[1,128], index: 5, kind: input, shape index: {}]   ;;  %s5546_s6 = inlined_call_operand.hbm [shape: f32[8,128], index: 6, kind: output, shape index: {}]  }
   0x1   :  { %13 = vsyncpa [#allocation5 + $0x1], 0 }
   0x2   :  { %14 = vsyncpa [#allocation6], 0  ;;  %s4751_s21 = smov 0   ;;  %s4753_s22 = smov 0  }
   0x3   :  { %s4755_s23 = smov 0   ;;  %s4757_s24 = smov 0  }
   0x4 LB: > { %s4770_s25 = sadd.s32 4294967295, %s4706_s24   ;;  %s4773_s26 = sadd.s32 1, %s4706_s24   ;;  %s4706_s24 = sphi %s4757_s24, %s5555_s24   ;;  %s4702_s23 = sphi %s4755_s23, %s5554_s23   ;;  %s4698_s22 = sphi %s4753_s22, %s5553_s22   ;;  %s4694_s21 = sphi %s4751_s21, %s5552_s21  }
   0x5   : > { %s71_s27 = ssub.s32 %s4706_s24, %s4773_s26  ;;  %s74_s28 = sadd.s32 1, %s4702_s23 }
   0x6   : > { %p72_p0 = scmp.eq.s32.totalorder %s71_s27, 0  ;;  %p81_p1 = scmp.ne.s32.totalorder %s4702_s23, %s4698_s22 }
   0x7   : > { %p82_p2 = scmp.eq.s32.totalorder %s4706_s24, 0  ;;  %p87_p3 = scmp.ne.s32.totalorder %s4698_s22, %s4694_s21 }
   0x8   : > { %s4783_s29 = scalar_select %p72_p0, %s4702_s23, %s74_s28  }
   0x9   : > { %p83_p4 = por %p82_p2, %p81_p1  ;;  %p88_p5 = scmp.eq.s32.totalorder %s4770_s25, 0 }
   0xa   : > { %p4430_p6 = scmp.lt.s32.totalorder %s4706_s24, 2  ;;  %s217_s7 = sand.u32 1, %s4702_s23  }
   0xb   : > { %p4787_p7 = por %p88_p5, %p87_p3  ;;  %s3630_s8 = sshll.u32 %s217_s7, 7 }
   0xc   : > { %s3762_s9 = sshll.u32 %s4706_s24, 11  ;;  %s221_s13 = scalar_lea.vmem [#allocation4], %s3630_s8 }
   0xd   : > { %s5548_s30 = scalar_select %p4787_p7, 1, 0 }
   0xe   : > { %s4796_s12 = scalar_lea.hbm %s5542_s2, %s3762_s9  ;;  %s228_s14 = sshll.u32 %s221_s13, 4  ;;  %s4798_s14 = int_to_ptr.vmem [resolvable:$true] %s228_s14 }
   0xf   : > { %p4800_p8 = pnand %p4430_p6, %p83_p4  ;;  %s4805_s16 = scalar_lea.sflag [#allocation5], %s217_s7 }
  0x10   : > { %s4616_s17 = scalar_lea.hbm %s4796_s12, 2048  ;;  %s4621_s20 = scalar_lea.hbm %s5542_s2, 4096 }
  0x11   : > { %p4617_p10 = scmp.ne.s32.totalorder %s4796_s12, %s4616_s17  ;;  %p4618_p11 = pneg %p4800_p8 }
  0x12   : > { %p4622_p0 = scmp.lt.s32.totalorder %s4796_s12, %s5542_s2  ;;  %p4623_p1 = scmp.lt.s32.totalorder %s4621_s20, %s4616_s17 }
  0x13   : > { %p4619_p12 = pnand %p4618_p11, %p4617_p10 }
  0x14   : > { %p4624_p2 = por %p4623_p1, %p4622_p0 }
  0x15   : > { %p4620_p13 = pneg %p4619_p12 }
  0x17   : > { %p4625_p3 = pnand %p4624_p2, %p4620_p13 }
  0x19   : > { %4628 = shalt.err (!%p4625_p3)
}
  0x1a   : > { %s4629_s28 = scalar_lea.vmem %s4798_s14, 2048  ;;  %s4708_s7 = smov [#allocation4]  }
  0x1b   : > { %p4630_p4 = scmp.ne.s32.totalorder %s4798_s14, %s4629_s28  ;;  %s4634_s8 = sshll.u32 %s4708_s7, 4  ;;  %s4635_s8 = int_to_ptr.vmem [resolvable:$false] %s4634_s8 }
  0x1c   : > { %s4636_s9 = scalar_lea.vmem %s4635_s8, 4096  ;;  %p4637_p10 = scmp.lt.s32.totalorder %s4798_s14, %s4635_s8 }
  0x1d   : > { %p4632_p5 = pnand %p4630_p4, %p4618_p11  ;;  %p4638_p12 = scmp.lt.s32.totalorder %s4636_s9, %s4629_s28 }
  0x1f   : > { %p4633_p6 = pneg %p4632_p5  ;;  %p4639_p9 = por %p4638_p12, %p4637_p10 }
  0x21   : > { %p4640_p7 = pnand %p4639_p9, %p4633_p6 }
  0x23   : > { %4643 = shalt.err (!%p4640_p7)
}
  0x24   : > { %s4709_s10 = smov 128   ;;  %s4710_s11 = smov 8  }
  0x25   : > { %4429 = dma.hbm_to_vmem [thread:$0]  (!%p4800_p8), %s4796_s12, 2048, %s4798_s14, %s4805_s16, %s4709_s10, %s4709_s10, %s4710_s11  }
  0x26   : > { %p243_p11 = scmp.lt.s32.totalorder %s4706_s24, 3  ;;  %p5550_p13 = scmp.ge.s32.totalorder %s4706_s24, 1 }
  0x28   : > { %p244_p0 = pnand %p5550_p13, %p243_p11 }
  0x29   : > { %s249_s13 = sand.u32 (!%p244_p0), 1, %s4698_s22   ;;  %p5551_p7 = scmp.ne.s32.totalorder (!%p244_p0), %s5548_s30, 0 }
  0x2a   : > { %247 = sbr.rel (%p244_p0) target bundleno = 2532 (0x9e4), region = 44  ;;  %s3634_s17 = sshll.u32 (!%p244_p0), %s249_s13, 7 }
  0x2b   : > { %s250_s18 = scalar_lea.sflag (!%p244_p0), [#allocation5], %s249_s13  ;;  %s4830_s19 = scalar_lea.vmem (!%p244_p0), [#allocation4], %s3634_s17 }
  0x2f   : > { %4685 = dma.done.wait (%p5551_p7), %s250_s18, 2048  }
  0x30   : > { %4687 = vsyncadd (%p5551_p7), %s250_s18, 4294965248  ;;  %p286_p9 = scmp.lt.s32.totalorder %s4770_s25, 1  ;;  %p3638_p8 = scmp.ne.s32.totalorder %s4770_s25, 0 }
  0x32   : > { %s287_s12 = scalar_select %p286_p9, %s4770_s25, 1 }
  0x33   : > { %298 = sbr.rel (%p3638_p8) target bundleno = 73 (0x49), region = 52 }
  0x34   : > { %s3763_s14 = sshll.u32 %s287_s12, 7  ;;  %s3637_s24 = sshll.u32 %s287_s12, 2 }
  0x35   : > { %s4841_s20 = scalar_lea.vmem %s5541_s1, %s3763_s14  ;;  %s4846_s28 = scalar_lea.vmem %s5543_s3, %s3637_s24 }
  0x38   : > { %v299_v0 = vld [vmem:[%s5540_s0] sm:$0xff]  ;;  %vm331_vm0 = vcmask 261120   ;;  %v300_v1 = vld [vmem:[%s5540_s0 + $0x8] sm:$0xff]  ;;  %v301_v2 = vld [vmem:[%s5540_s0 + $0x10] sm:$0xff] }
  0x39   : > { %332 = vst.msk [vmem:[#allocation2] sm:$0xff] %vm331_vm0, %v299_v0  ;;  %333 = vst.msk [vmem:[#allocation2 + $0x8] sm:$0xff] %vm331_vm0, %v300_v1  ;;  %v302_v3 = vld [vmem:[%s5540_s0 + $0x18] sm:$0xff]  ;;  %v303_v4 = vld [vmem:[%s5540_s0 + $0x20] sm:$0xff] }
  0x3a   : > { %334 = vst.msk [vmem:[#allocation2 + $0x10] sm:$0xff] %vm331_vm0, %v301_v2  ;;  %v304_v5 = vld [vmem:[%s5540_s0 + $0x28] sm:$0xff]  ;;  %335 = vst.msk [vmem:[#allocation2 + $0x18] sm:$0xff] %vm331_vm0, %v302_v3  ;;  %v305_v6 = vld [vmem:[%s5540_s0 + $0x30] sm:$0xff] }
  0x3b   : > { %336 = vst.msk [vmem:[#allocation2 + $0x20] sm:$0xff] %vm331_vm0, %v303_v4  ;;  %337 = vst.msk [vmem:[#allocation2 + $0x28] sm:$0xff] %vm331_vm0, %v304_v5  ;;  %v306_v7 = vld [vmem:[%s5540_s0 + $0x38] sm:$0xff]  ;;  %v307_v8 = vld [vmem:[%s5540_s0 + $0x40] sm:$0xff] }
  0x3c   : > { %338 = vst.msk [vmem:[#allocation2 + $0x30] sm:$0xff] %vm331_vm0, %v305_v6  ;;  %339 = vst.msk [vmem:[#allocation2 + $0x38] sm:$0xff] %vm331_vm0, %v306_v7  ;;  %v308_v9 = vld [vmem:[%s5540_s0 + $0x48] sm:$0xff]  ;;  %v309_v10 = vld [vmem:[%s5540_s0 + $0x50] sm:$0xff] }
  0x3d   : > { %340 = vst.msk [vmem:[#allocation2 + $0x40] sm:$0xff] %vm331_vm0, %v307_v8  ;;  %v310_v11 = vld [vmem:[%s5540_s0 + $0x58] sm:$0xff]  ;;  %341 = vst.msk [vmem:[#allocation2 + $0x48] sm:$0xff] %vm331_vm0, %v308_v9  ;;  %v311_v12 = vld [vmem:[%s5540_s0 + $0x60] sm:$0xff] }
  0x3e   : > { %342 = vst.msk [vmem:[#allocation2 + $0x50] sm:$0xff] %vm331_vm0, %v309_v10  ;;  %343 = vst.msk [vmem:[#allocation2 + $0x58] sm:$0xff] %vm331_vm0, %v310_v11  ;;  %v312_v13 = vld [vmem:[%s5540_s0 + $0x68] sm:$0xff]  ;;  %v313_v14 = vld [vmem:[%s5540_s0 + $0x70] sm:$0xff] }
  0x3f   : > { %344 = vst.msk [vmem:[#allocation2 + $0x60] sm:$0xff] %vm331_vm0, %v311_v12  ;;  %345 = vst.msk [vmem:[#allocation2 + $0x68] sm:$0xff] %vm331_vm0, %v312_v13  ;;  %v314_v15 = vld [vmem:[%s5540_s0 + $0x78] sm:$0xff]  ;;  %v315_v16 = vld [vmem:[%s5540_s0 + $0x80] sm:$0xff] }
  0x40   : > { %346 = vst.msk [vmem:[#allocation2 + $0x70] sm:$0xff] %vm331_vm0, %v313_v14  ;;  %v316_v17 = vld [vmem:[%s5540_s0 + $0x88] sm:$0xff]  ;;  %347 = vst.msk [vmem:[#allocation2 + $0x78] sm:$0xff] %vm331_vm0, %v314_v15  ;;  %v317_v18 = vld [vmem:[%s5540_s0 + $0x90] sm:$0xff] }
  0x41   : > { %348 = vst.msk [vmem:[#allocation2 + $0x80] sm:$0xff] %vm331_vm0, %v315_v16  ;;  %349 = vst.msk [vmem:[#allocation2 + $0x88] sm:$0xff] %vm331_vm0, %v316_v17  ;;  %v318_v19 = vld [vmem:[%s5540_s0 + $0x98] sm:$0xff]  ;;  %v319_v20 = vld [vmem:[%s5540_s0 + $0xa0] sm:$0xff] }
  0x42   : > { %350 = vst.msk [vmem:[#allocation2 + $0x90] sm:$0xff] %vm331_vm0, %v317_v18  ;;  %351 = vst.msk [vmem:[#allocation2 + $0x98] sm:$0xff] %vm331_vm0, %v318_v19  ;;  %v320_v21 = vld [vmem:[%s5540_s0 + $0xa8] sm:$0xff]  ;;  %v321_v22 = vld [vmem:[%s5540_s0 + $0xb0] sm:$0xff] }
  0x43   : > { %352 = vst.msk [vmem:[#allocation2 + $0xa0] sm:$0xff] %vm331_vm0, %v319_v20  ;;  %v322_v23 = vld [vmem:[%s5540_s0 + $0xb8] sm:$0xff]  ;;  %353 = vst.msk [vmem:[#allocation2 + $0xa8] sm:$0xff] %vm331_vm0, %v320_v21  ;;  %v323_v24 = vld [vmem:[%s5540_s0 + $0xc0] sm:$0xff] }
  0x44   : > { %354 = vst.msk [vmem:[#allocation2 + $0xb0] sm:$0xff] %vm331_vm0, %v321_v22  ;;  %355 = vst.msk [vmem:[#allocation2 + $0xb8] sm:$0xff] %vm331_vm0, %v322_v23  ;;  %v324_v25 = vld [vmem:[%s5540_s0 + $0xc8] sm:$0xff]  ;;  %v325_v26 = vld [vmem:[%s5540_s0 + $0xd0] sm:$0xff] }
  0x45   : > { %356 = vst.msk [vmem:[#allocation2 + $0xc0] sm:$0xff] %vm331_vm0, %v323_v24  ;;  %357 = vst.msk [vmem:[#allocation2 + $0xc8] sm:$0xff] %vm331_vm0, %v324_v25  ;;  %v326_v27 = vld [vmem:[%s5540_s0 + $0xd8] sm:$0xff]  ;;  %v327_v28 = vld [vmem:[%s5540_s0 + $0xe0] sm:$0xff] }
  0x46   : > { %358 = vst.msk [vmem:[#allocation2 + $0xd0] sm:$0xff] %vm331_vm0, %v325_v26  ;;  %v328_v29 = vld [vmem:[%s5540_s0 + $0xe8] sm:$0xff]  ;;  %359 = vst.msk [vmem:[#allocation2 + $0xd8] sm:$0xff] %vm331_vm0, %v326_v27  ;;  %v329_v30 = vld [vmem:[%s5540_s0 + $0xf0] sm:$0xff] }
  0x47   : > { %360 = vst.msk [vmem:[#allocation2 + $0xe0] sm:$0xff] %vm331_vm0, %v327_v28  ;;  %361 = vst.msk [vmem:[#allocation2 + $0xe8] sm:$0xff] %vm331_vm0, %v328_v29  ;;  %v330_v31 = vld [vmem:[%s5540_s0 + $0xf8] sm:$0xff] }
  0x48   : > { %362 = vst.msk [vmem:[#allocation2 + $0xf0] sm:$0xff] %vm331_vm0, %v329_v30  ;;  %363 = vst.msk [vmem:[#allocation2 + $0xf8] sm:$0xff] %vm331_vm0, %v330_v31 }
  0x49 PF: > { %p3639_p1 = scmp.le.s32.totalorder %s4770_s25, 0 }
  0x4b   : > { %367 = sbr.rel (%p3639_p1) target bundleno = 317 (0x13d), region = 56 }
  0x50   : > { %v379_v32 = vld [vmem:[%s4841_s20 + $0x18] sm:$0xff]  ;;  %v378_v34 = vld [vmem:[%s4841_s20 + $0x10] sm:$0xff]  ;;  %v377_v36 = vld [vmem:[%s4841_s20 + $0x8] sm:$0xff]  ;;  %vm387_vm1 = vcmask 261120  }
  0x51   : > { %v3652_v33 = vld [vmem:[%s4841_s20 + $0x38] sm:$0xff]  ;;  %3977 = vmatprep.subr.mxu0 %v379_v32  ;;  %v3651_v35 = vld [vmem:[%s4841_s20 + $0x30] sm:$0xff]  ;;  %v3650_v37 = vld [vmem:[%s4841_s20 + $0x28] sm:$0xff] }
  0x52   : > { %3997 = vmatprep.subr.mxu1 %v3652_v33  ;;  %3978 = vmatpush3.msra.mxu0 %v379_v32  ;;  %v376_v38 = vld [vmem:[%s4841_s20] sm:$0xff]  ;;  %v369_v41 = vld [vmem:[#allocation3 + $0x8] sm:$0xff]  ;;  %v3666_v42 = vld [vmem:[%s4841_s20 + $0x58] sm:$0xff] }
  0x53   : > { %3998 = vmatpush3.msra.mxu1 %v3652_v33  ;;  %3979 = vmatprep.subr.mxu0 %v378_v34  ;;  %v3649_v39 = vld [vmem:[%s4841_s20 + $0x20] sm:$0xff]  ;;  %v3680_v43 = vld [vmem:[%s4841_s20 + $0x78] sm:$0xff]  ;;  %v370_v44 = vld [vmem:[#allocation3 + $0x10] sm:$0xff] }
  0x54   : > { %3999 = vmatprep.subr.mxu1 %v3651_v35  ;;  %3980 = vmatpush3.msra.mxu0 %v378_v34  ;;  %v368_v40 = vld [vmem:[#allocation3] sm:$0xff]  ;;  %v371_v45 = vld [vmem:[#allocation3 + $0x18] sm:$0xff]  ;;  %v3665_v46 = vld [vmem:[%s4841_s20 + $0x50] sm:$0xff] }
  0x55   : > { %4000 = vmatpush3.msra.mxu1 %v3651_v35  ;;  %3981 = vmatprep.subr.mxu0 %v377_v36  ;;  %v3679_v47 = vld [vmem:[%s4841_s20 + $0x70] sm:$0xff]  ;;  %v372_v48 = vld [vmem:[#allocation3 + $0x20] sm:$0xff]  ;;  %v373_v49 = vld [vmem:[#allocation3 + $0x28] sm:$0xff] }
  0x56   : > { %4001 = vmatprep.subr.mxu1 %v3650_v37  ;;  %3982 = vmatpush3.msra.mxu0 %v377_v36  ;;  %v3664_v50 = vld [vmem:[%s4841_s20 + $0x48] sm:$0xff]  ;;  %v374_v52 = vld [vmem:[#allocation3 + $0x30] sm:$0xff]  ;;  %v375_v53 = vld [vmem:[#allocation3 + $0x38] sm:$0xff] }
  0x57   : > { %4002 = vmatpush3.msra.mxu1 %v3650_v37  ;;  %3983 = vmatprep.subr.mxu0 %v376_v38  ;;  %v3678_v51 = vld [vmem:[%s4841_s20 + $0x68] sm:$0xff]  ;;  %v3663_v54 = vld [vmem:[%s4841_s20 + $0x40] sm:$0xff] }
  0x58   : > { %4003 = vmatprep.subr.mxu1 %v3649_v39  ;;  %3984 = vmatpush3.msra.mxu0 %v376_v38  ;;  %v3677_v55 = vld [vmem:[%s4841_s20 + $0x60] sm:$0xff] }
  0x59   : > { %3985 = vmatprep.mubr.msk.f32.mxu0 %vm387_vm1, %v368_v40  ;;  %4004 = vmatpush3.msra.mxu1 %v3649_v39  ;;  %v3640_v56 = vld [vmem:[%s4846_s28] ss:$0 sm:$0xff]  ;;  %v3654_v57 = vld [vmem:[%s4846_s28 + $0x1] ss:$0 sm:$0xff]  ;;  %v3668_v24 = vld [vmem:[%s4846_s28 + $0x2] ss:$0 sm:$0xff] }
  0x5a   : > { %4005 = vmatprep.mubr.msk.f32.mxu1 %vm387_vm1, %v368_v40  ;;  %3986 = vmatmul.mubr.msk.f32.vlgmr.msra.gmra.mxu0 %vm387_vm1, %v369_v41  ;;  %v3682_v25 = vld [vmem:[%s4846_s28 + $0x3] ss:$0 sm:$0xff] }
  0x5b   : > { %4006 = vmatmul.mubr.msk.f32.vlgmr.msra.gmra.mxu1 %vm387_vm1, %v369_v41  ;;  %4017 = vmatprep.subr.mxu0 %v3666_v42 }
  0x5c   : > { %4037 = vmatprep.subr.mxu1 %v3680_v43  ;;  %4018 = vmatpush3.msra.mxu0 %v3666_v42 }
  0x5d   : > { %4038 = vmatpush3.msra.mxu1 %v3680_v43  ;;  %3988 = vmatprep.mubr.msk.f32.mxu0 %vm387_vm1, %v370_v44 }
  0x5e   : > { %4008 = vmatprep.mubr.msk.f32.mxu1 %vm387_vm1, %v370_v44  ;;  %3989 = vmatmul.mubr.msk.f32.gmra.mxu0 %vm387_vm1, %v371_v45 }
  0x5f   : > { %4009 = vmatmul.mubr.msk.f32.gmra.mxu1 %vm387_vm1, %v371_v45  ;;  %4019 = vmatprep.subr.mxu0 %v3665_v46 }
  0x60   : > { %4039 = vmatprep.subr.mxu1 %v3679_v47  ;;  %4020 = vmatpush3.msra.mxu0 %v3665_v46 }
  0x61   : > { %4040 = vmatpush3.msra.mxu1 %v3679_v47  ;;  %3991 = vmatprep.mubr.msk.f32.mxu0 %vm387_vm1, %v372_v48 }
  0x62   : > { %4011 = vmatprep.mubr.msk.f32.mxu1 %vm387_vm1, %v372_v48  ;;  %3992 = vmatmul.mubr.msk.f32.gmra.mxu0 %vm387_vm1, %v373_v49 }
  0x63   : > { %4012 = vmatmul.mubr.msk.f32.gmra.mxu1 %vm387_vm1, %v373_v49  ;;  %4021 = vmatprep.subr.mxu0 %v3664_v50 }
  0x64   : > { %4041 = vmatprep.subr.mxu1 %v3678_v51  ;;  %4022 = vmatpush3.msra.mxu0 %v3664_v50 }
  0x65   : > { %4042 = vmatpush3.msra.mxu1 %v3678_v51  ;;  %3994 = vmatprep.mubr.msk.f32.mxu0 %vm387_vm1, %v374_v52 }
  0x66   : > { %4014 = vmatprep.mubr.msk.f32.mxu1 %vm387_vm1, %v374_v52  ;;  %3995 = vmatmul.mubr.msk.f32.gmra.mxu0 %vm387_vm1, %v375_v53 }
  0x67   : > { %4015 = vmatmul.mubr.msk.f32.gmra.mxu1 %vm387_vm1, %v375_v53  ;;  %4023 = vmatprep.subr.mxu0 %v3663_v54 }
  0x68   : > { %4043 = vmatprep.subr.mxu1 %v3677_v55  ;;  %4024 = vmatpush3.msra.mxu0 %v3663_v54 }
  0x69   : > { %4044 = vmatpush3.msra.mxu1 %v3677_v55  ;;  %4025 = vmatprep.mubr.msk.f32.mxu0 %vm387_vm1, %v368_v40 }
  0x6a   : > { %4045 = vmatprep.mubr.msk.f32.mxu1 %vm387_vm1, %v368_v40  ;;  %4026 = vmatmul.mubr.msk.f32.vlgmr.msra.gmra.mxu0 %vm387_vm1, %v369_v41 }
  0x6b   : > { %4046 = vmatmul.mubr.msk.f32.vlgmr.msra.gmra.mxu1 %vm387_vm1, %v369_v41  ;;  %4028 = vmatprep.mubr.msk.f32.mxu0 %vm387_vm1, %v370_v44 }
  0x6c   : > { %4048 = vmatprep.mubr.msk.f32.mxu1 %vm387_vm1, %v370_v44 }
  0x6e   : > { %4029 = vmatmul.mubr.msk.f32.gmra.mxu0 %vm387_vm1, %v371_v45 }
  0x6f   : > { %4049 = vmatmul.mubr.msk.f32.gmra.mxu1 %vm387_vm1, %v371_v45  ;;  %4031 = vmatprep.mubr.msk.f32.mxu0 %vm387_vm1, %v372_v48 }
  0x70   : > { %4051 = vmatprep.mubr.msk.f32.mxu1 %vm387_vm1, %v372_v48 }
  0x72   : > { %4032 = vmatmul.mubr.msk.f32.gmra.mxu0 %vm387_vm1, %v373_v49 }
  0x73   : > { %4052 = vmatmul.mubr.msk.f32.gmra.mxu1 %vm387_vm1, %v373_v49  ;;  %4034 = vmatprep.mubr.msk.f32.mxu0 %vm387_vm1, %v374_v52 }
  0x74   : > { %4054 = vmatprep.mubr.msk.f32.mxu1 %vm387_vm1, %v374_v52 }
  0x76   : > { %4035 = vmatmul.mubr.msk.f32.gmra.mxu0 %vm387_vm1, %v375_v53 }
  0x77   : > { %4055 = vmatmul.mubr.msk.f32.gmra.mxu1 %vm387_vm1, %v375_v53 }
 0x11a   : > { %v3987_v58 = vpop.f32.mrf.mxu0 }
 0x11b   : > { %v4007_v59 = vpop.f32.mrf.mxu1  ;;  %v484_v60 = vadd.f32 %v3987_v58, %v3640_v56 }
 0x11c   : > { %v610_v61 = vadd.f32 %v4007_v59, %v3654_v57  ;;  %v478_v62 = vpop.f32.mrf.mxu0 }
 0x11d   : > { %v604_v63 = vpop.f32.mrf.mxu1  ;;  %518 = vst.msk [vmem:[#allocation2 + $0x8] sm:$0xff] %vm387_vm1, %v484_v60  ;;  %v479_v0 = vadd.f32 %v3640_v56, %v478_v62 }
 0x11e   : > { %645 = vst.msk [vmem:[#allocation2 + $0x48] sm:$0xff] %vm387_vm1, %v610_v61  ;;  %v605_v1 = vadd.f32 %v3654_v57, %v604_v63  ;;  %v3990_v2 = vpop.f32.mrf.mxu0 }
 0x11f   : > { %v4010_v3 = vpop.f32.mrf.mxu1  ;;  %517 = vst.msk [vmem:[#allocation2] sm:$0xff] %vm387_vm1, %v479_v0  ;;  %v494_v4 = vadd.f32 %v3990_v2, %v3640_v56 }
 0x120   : > { %644 = vst.msk [vmem:[#allocation2 + $0x40] sm:$0xff] %vm387_vm1, %v605_v1  ;;  %v620_v5 = vadd.f32 %v4010_v3, %v3654_v57  ;;  %v488_v6 = vpop.f32.mrf.mxu0 }
 0x121   : > { %v614_v7 = vpop.f32.mrf.mxu1  ;;  %520 = vst.msk [vmem:[#allocation2 + $0x18] sm:$0xff] %vm387_vm1, %v494_v4  ;;  %v489_v8 = vadd.f32 %v3640_v56, %v488_v6 }
 0x122   : > { %647 = vst.msk [vmem:[#allocation2 + $0x58] sm:$0xff] %vm387_vm1, %v620_v5  ;;  %v615_v9 = vadd.f32 %v3654_v57, %v614_v7  ;;  %v3993_v10 = vpop.f32.mrf.mxu0 }
 0x123   : > { %v4013_v11 = vpop.f32.mrf.mxu1  ;;  %519 = vst.msk [vmem:[#allocation2 + $0x10] sm:$0xff] %vm387_vm1, %v489_v8  ;;  %v504_v12 = vadd.f32 %v3993_v10, %v3640_v56 }
 0x124   : > { %646 = vst.msk [vmem:[#allocation2 + $0x50] sm:$0xff] %vm387_vm1, %v615_v9  ;;  %v630_v13 = vadd.f32 %v4013_v11, %v3654_v57  ;;  %v498_v14 = vpop.f32.mrf.mxu0 }
 0x125   : > { %v624_v15 = vpop.f32.mrf.mxu1  ;;  %522 = vst.msk [vmem:[#allocation2 + $0x28] sm:$0xff] %vm387_vm1, %v504_v12  ;;  %v499_v16 = vadd.f32 %v3640_v56, %v498_v14 }
 0x126   : > { %649 = vst.msk [vmem:[#allocation2 + $0x68] sm:$0xff] %vm387_vm1, %v630_v13  ;;  %v625_v17 = vadd.f32 %v3654_v57, %v624_v15  ;;  %v3996_v18 = vpop.f32.mrf.mxu0 }
 0x127   : > { %v4016_v19 = vpop.f32.mrf.mxu1  ;;  %521 = vst.msk [vmem:[#allocation2 + $0x20] sm:$0xff] %vm387_vm1, %v499_v16  ;;  %v514_v20 = vadd.f32 %v3996_v18, %v3640_v56 }
 0x128   : > { %648 = vst.msk [vmem:[#allocation2 + $0x60] sm:$0xff] %vm387_vm1, %v625_v17  ;;  %v640_v21 = vadd.f32 %v4016_v19, %v3654_v57  ;;  %v508_v22 = vpop.f32.mrf.mxu0 }
 0x129   : > { %v634_v23 = vpop.f32.mrf.mxu1  ;;  %524 = vst.msk [vmem:[#allocation2 + $0x38] sm:$0xff] %vm387_vm1, %v514_v20  ;;  %v509_v26 = vadd.f32 %v3640_v56, %v508_v22 }
 0x12a   : > { %651 = vst.msk [vmem:[#allocation2 + $0x78] sm:$0xff] %vm387_vm1, %v640_v21  ;;  %v635_v27 = vadd.f32 %v3654_v57, %v634_v23  ;;  %v4027_v28 = vpop.f32.mrf.mxu0 }
 0x12b   : > { %v4047_v29 = vpop.f32.mrf.mxu1  ;;  %523 = vst.msk [vmem:[#allocation2 + $0x30] sm:$0xff] %vm387_vm1, %v509_v26  ;;  %v737_v30 = vadd.f32 %v4027_v28, %v3668_v24 }
 0x12c   : > { %650 = vst.msk [vmem:[#allocation2 + $0x70] sm:$0xff] %vm387_vm1, %v635_v27  ;;  %v864_v31 = vadd.f32 %v4047_v29, %v3682_v25  ;;  %v731_v32 = vpop.f32.mrf.mxu0 }
 0x12d   : > { %v858_v33 = vpop.f32.mrf.mxu1  ;;  %772 = vst.msk [vmem:[#allocation2 + $0x88] sm:$0xff] %vm387_vm1, %v737_v30  ;;  %v732_v34 = vadd.f32 %v3668_v24, %v731_v32 }
 0x12e   : > { %899 = vst.msk [vmem:[#allocation2 + $0xc8] sm:$0xff] %vm387_vm1, %v864_v31  ;;  %v859_v35 = vadd.f32 %v3682_v25, %v858_v33  ;;  %v4030_v36 = vpop.f32.mrf.mxu0 }
 0x12f   : > { %v4050_v37 = vpop.f32.mrf.mxu1  ;;  %771 = vst.msk [vmem:[#allocation2 + $0x80] sm:$0xff] %vm387_vm1, %v732_v34  ;;  %v747_v38 = vadd.f32 %v4030_v36, %v3668_v24 }
 0x130   : > { %898 = vst.msk [vmem:[#allocation2 + $0xc0] sm:$0xff] %vm387_vm1, %v859_v35  ;;  %v874_v39 = vadd.f32 %v4050_v37, %v3682_v25  ;;  %v741_v40 = vpop.f32.mrf.mxu0 }
 0x131   : > { %v868_v41 = vpop.f32.mrf.mxu1  ;;  %774 = vst.msk [vmem:[#allocation2 + $0x98] sm:$0xff] %vm387_vm1, %v747_v38  ;;  %v742_v42 = vadd.f32 %v3668_v24, %v741_v40 }
 0x132   : > { %901 = vst.msk [vmem:[#allocation2 + $0xd8] sm:$0xff] %vm387_vm1, %v874_v39  ;;  %v869_v43 = vadd.f32 %v3682_v25, %v868_v41  ;;  %v4033_v44 = vpop.f32.mrf.mxu0 }
 0x133   : > { %v4053_v45 = vpop.f32.mrf.mxu1  ;;  %773 = vst.msk [vmem:[#allocation2 + $0x90] sm:$0xff] %vm387_vm1, %v742_v42  ;;  %v757_v46 = vadd.f32 %v4033_v44, %v3668_v24 }
 0x134   : > { %900 = vst.msk [vmem:[#allocation2 + $0xd0] sm:$0xff] %vm387_vm1, %v869_v43  ;;  %v884_v47 = vadd.f32 %v4053_v45, %v3682_v25  ;;  %v751_v48 = vpop.f32.mrf.mxu0 }
 0x135   : > { %v878_v49 = vpop.f32.mrf.mxu1  ;;  %776 = vst.msk [vmem:[#allocation2 + $0xa8] sm:$0xff] %vm387_vm1, %v757_v46  ;;  %v752_v50 = vadd.f32 %v3668_v24, %v751_v48 }
 0x136   : > { %903 = vst.msk [vmem:[#allocation2 + $0xe8] sm:$0xff] %vm387_vm1, %v884_v47  ;;  %v879_v51 = vadd.f32 %v3682_v25, %v878_v49  ;;  %v4036_v52 = vpop.f32.mrf.mxu0 }
 0x137   : > { %v4056_v53 = vpop.f32.mrf.mxu1  ;;  %775 = vst.msk [vmem:[#allocation2 + $0xa0] sm:$0xff] %vm387_vm1, %v752_v50  ;;  %v767_v54 = vadd.f32 %v4036_v52, %v3668_v24 }
 0x138   : > { %902 = vst.msk [vmem:[#allocation2 + $0xe0] sm:$0xff] %vm387_vm1, %v879_v51  ;;  %v894_v55 = vadd.f32 %v4056_v53, %v3682_v25  ;;  %v761_v56 = vpop.f32.mrf.mxu0 }
 0x139   : > { %v888_v57 = vpop.f32.mrf.mxu1  ;;  %778 = vst.msk [vmem:[#allocation2 + $0xb8] sm:$0xff] %vm387_vm1, %v767_v54  ;;  %v762_v58 = vadd.f32 %v3668_v24, %v761_v56 }
 0x13a   : > { %905 = vst.msk [vmem:[#allocation2 + $0xf8] sm:$0xff] %vm387_vm1, %v894_v55  ;;  %v889_v59 = vadd.f32 %v3682_v25, %v888_v57 }
 0x13b   : > { %777 = vst.msk [vmem:[#allocation2 + $0xb0] sm:$0xff] %vm387_vm1, %v762_v58 }
 0x13c   : > { %904 = vst.msk [vmem:[#allocation2 + $0xf0] sm:$0xff] %vm387_vm1, %v889_v59 }
 0x13d PF: > { %v5063_v60 = vld [vmem:[%s4830_s19 + $0x18] sm:$0xff]  ;;  %v4711_v62 = vmov 0.0   ;;  %v5071_v63 = vld [vmem:[%s4830_s19 + $0x10] sm:$0xff]  ;;  %v5081_v1 = vld [vmem:[%s4830_s19 + $0x8] sm:$0xff]  ;;  %vm4712_vm2 = vmmov 0   ;;  %vm926_vm3 = vcmask 261120  }
 0x13e   : > { %v5066_v61 = vld [vmem:[%s4830_s19 + $0x38] sm:$0xff]  ;;  %4057 = vmatprep.subr.mxu0 %v4711_v62  ;;  %4068 = vmatprep.subr.mxu1 %v4711_v62  ;;  %v5074_v0 = vld [vmem:[%s4830_s19 + $0x30] sm:$0xff]  ;;  %v5084_v2 = vld [vmem:[%s4830_s19 + $0x28] sm:$0xff]  ;;  %p3755_p2 = scmp.ne.s32.totalorder %s4770_s25, 1 }
 0x13f   : > { %4058 = vmatpush3.msra.mxu0 %v5063_v60  ;;  %4069 = vmatpush3.msra.mxu1 %v5066_v61  ;;  %v5091_v3 = vld [vmem:[%s4830_s19] sm:$0xff]  ;;  %v5107_v5 = vld [vmem:[%s4830_s19 + $0x58] sm:$0xff]  ;;  %v5117_v7 = vld [vmem:[%s4830_s19 + $0x50] sm:$0xff] }
 0x140   : > { %4059 = vmatprep.subr.mxu0 %v4711_v62  ;;  %4070 = vmatprep.subr.mxu1 %v4711_v62  ;;  %v5096_v4 = vld [vmem:[%s4830_s19 + $0x20] sm:$0xff]  ;;  %v5110_v6 = vld [vmem:[%s4830_s19 + $0x78] sm:$0xff]  ;;  %v5120_v8 = vld [vmem:[%s4830_s19 + $0x70] sm:$0xff] }
 0x141   : > { %4060 = vmatpush3.msra.mxu0 %v5071_v63  ;;  %4071 = vmatpush3.msra.mxu1 %v5074_v0  ;;  %v5127_v9 = vld [vmem:[%s4830_s19 + $0x48] sm:$0xff]  ;;  %v5137_v11 = vld [vmem:[%s4830_s19 + $0x40] sm:$0xff] }
 0x142   : > { %4061 = vmatprep.subr.mxu0 %v4711_v62  ;;  %4072 = vmatprep.subr.mxu1 %v4711_v62  ;;  %v5130_v10 = vld [vmem:[%s4830_s19 + $0x68] sm:$0xff]  ;;  %v5142_v12 = vld [vmem:[%s4830_s19 + $0x60] sm:$0xff] }
 0x143   : > { %4062 = vmatpush3.msra.mxu0 %v5081_v1  ;;  %4073 = vmatpush3.msra.mxu1 %v5084_v2  ;;  %v925_v13 = vld [vmem:[#allocation2] sm:$0xff]  ;;  %v1245_v47 = vld [vmem:[#allocation2 + $0x8] sm:$0xff] }
 0x144   : > { %4063 = vmatprep.subr.mxu0 %v4711_v62  ;;  %4074 = vmatprep.subr.mxu1 %v4711_v62  ;;  %v1002_v14 = vld [vmem:[#allocation2 + $0x40] sm:$0xff]  ;;  %v1320_v48 = vld [vmem:[#allocation2 + $0x48] sm:$0xff] }
 0x145   : > { %4064 = vmatpush3.msra.mxu0 %v5091_v3  ;;  %4065 = vmatprep.mubr.msk.f32.mxu0 %vm4712_vm2, %v4711_v62  ;;  %v1148_v23 = vld [vmem:[#allocation2 + $0xc0] sm:$0xff]  ;;  %v1464_v57 = vld [vmem:[#allocation2 + $0xc8] sm:$0xff] }
 0x146   : > { %4075 = vmatpush3.msra.mxu1 %v5096_v4  ;;  %4076 = vmatprep.mubr.msk.f32.mxu1 %vm4712_vm2, %v4711_v62  ;;  %v1075_v27 = vld [vmem:[#allocation2 + $0x80] sm:$0xff] }
 0x147   : > { %4066 = vmatmul.mubr.f32.vlgmr.msra.gmra.mxu0 %v4711_v62  ;;  %4077 = vmatmul.mubr.f32.vlgmr.msra.gmra.mxu1 %v4711_v62 }
 0x148   : > { %4079 = vmatprep.subr.mxu0 %v4711_v62  ;;  %4090 = vmatprep.subr.mxu1 %v4711_v62 }
 0x149   : > { %4080 = vmatpush3.msra.mxu0 %v5107_v5  ;;  %4091 = vmatpush3.msra.mxu1 %v5110_v6 }
 0x14a   : > { %4081 = vmatprep.subr.mxu0 %v4711_v62  ;;  %4092 = vmatprep.subr.mxu1 %v4711_v62 }
 0x14b   : > { %4082 = vmatpush3.msra.mxu0 %v5117_v7  ;;  %4093 = vmatpush3.msra.mxu1 %v5120_v8 }
 0x14c   : > { %4083 = vmatprep.subr.mxu0 %v4711_v62  ;;  %4094 = vmatprep.subr.mxu1 %v4711_v62 }
 0x14d   : > { %4084 = vmatpush3.msra.mxu0 %v5127_v9  ;;  %4095 = vmatpush3.msra.mxu1 %v5130_v10 }
 0x14e   : > { %4085 = vmatprep.subr.mxu0 %v4711_v62  ;;  %4096 = vmatprep.subr.mxu1 %v4711_v62 }
 0x14f   : > { %4086 = vmatpush3.msra.mxu0 %v5137_v11  ;;  %4087 = vmatprep.mubr.msk.f32.mxu0 %vm4712_vm2, %v4711_v62 }
 0x150   : > { %4097 = vmatpush3.msra.mxu1 %v5142_v12  ;;  %4098 = vmatprep.mubr.msk.f32.mxu1 %vm4712_vm2, %v4711_v62 }
 0x151   : > { %4088 = vmatmul.mubr.f32.vlgmr.msra.gmra.mxu0 %v4711_v62  ;;  %4099 = vmatmul.mubr.f32.vlgmr.msra.gmra.mxu1 %v4711_v62 }
 0x152   : > { %4101 = vmatprep.subr.mxu0 %v4711_v62  ;;  %4112 = vmatprep.subr.mxu1 %v4711_v62 }
 0x153   : > { %4102 = vmatpush3.msra.mxu0 %v5063_v60  ;;  %4113 = vmatpush3.msra.mxu1 %v5066_v61 }
 0x154   : > { %4103 = vmatprep.subr.mxu0 %v4711_v62  ;;  %4114 = vmatprep.subr.mxu1 %v4711_v62 }
 0x155   : > { %4104 = vmatpush3.msra.mxu0 %v5071_v63  ;;  %4115 = vmatpush3.msra.mxu1 %v5074_v0 }
 0x156   : > { %4105 = vmatprep.subr.mxu0 %v4711_v62  ;;  %4116 = vmatprep.subr.mxu1 %v4711_v62 }
 0x157   : > { %4106 = vmatpush3.msra.mxu0 %v5081_v1  ;;  %4117 = vmatpush3.msra.mxu1 %v5084_v2 }
 0x158   : > { %4107 = vmatprep.subr.mxu0 %v4711_v62  ;;  %4118 = vmatprep.subr.mxu1 %v4711_v62 }
 0x159   : > { %4108 = vmatpush3.msra.mxu0 %v5091_v3  ;;  %4119 = vmatpush3.msra.mxu1 %v5096_v4 }
 0x15a   : > { %4109 = vmatprep.mubr.msk.f32.mxu0 %vm4712_vm2, %v4711_v62  ;;  %4120 = vmatprep.mubr.msk.f32.mxu1 %vm4712_vm2, %v4711_v62 }
 0x15b   : > { %4123 = vmatprep.subr.mxu0 %v4711_v62  ;;  %4134 = vmatprep.subr.mxu1 %v4711_v62 }
 0x207   : > { %v996_v15 = vpop.f32.mrf.mxu0  ;;  %v1069_v16 = vpop.f32.mrf.mxu1 }
 0x208   : > { %v1000_v17 = vadd.f32 %v996_v15, %v925_v13  ;;  %v1073_v18 = vadd.f32 %v1069_v16, %v1002_v14  ;;  %v1392_v16 = vld [vmem:[#allocation2 + $0x88] sm:$0xff] }
 0x209   : > { %v4067_v19 = vpop.f32.mrf.mxu0  ;;  %v4078_v20 = vpop.f32.mrf.mxu1 }
 0x20a   : > { %v3703_v21 = vmul.f32 -1.442695, %v1000_v17  ;;  %v3704_v22 = vmul.f32 -1.442695, %v1073_v18 }
 0x20c   : > { %4472 = vpow2.f32 %v3703_v21 }
 0x20d   : > { %4474 = vpow2.f32 %v3704_v22 }
 0x211   : > { %v1142_v24 = vpop.f32.mrf.mxu0  ;;  %v1215_v25 = vpop.f32.mrf.mxu1 }
 0x212   : > { %v1219_v26 = vadd.f32 %v1215_v25, %v1148_v23  ;;  %v1146_v31 = vadd.f32 %v1142_v24, %v1075_v27 }
 0x213   : > { %v4089_v28 = vpop.f32.mrf.mxu0  ;;  %v4100_v29 = vpop.f32.mrf.mxu1 }
 0x214   : > { %v3705_v30 = vmul.f32 -1.442695, %v1219_v26 }
 0x216   : > { %4476 = vpow2.f32 %v3705_v30 }
 0x217   : > { %4478 = vtanh.f32 %v1146_v31 }
 0x219   : > { %v4473_v32 = vpop.eup %4472 }
 0x21a   : > { %v4475_v33 = vpop.eup %4474  ;;  %v1223_v34 = vadd.f32 1.0, %v4473_v32 }
 0x21b   : > { %v1229_v35 = vadd.f32 1.0, %v4475_v33 }
 0x21c   : > { %4480 = vrcp.f32 %v1223_v34  ;;  %v1561_v34 = vld [vmem:[#allocation2 + $0x10] sm:$0xff] }
 0x21d   : > { %4482 = vrcp.f32 %v1229_v35  ;;  %v1636_v35 = vld [vmem:[#allocation2 + $0x50] sm:$0xff] }
 0x223   : > { %v4477_v36 = vpop.eup %4476 }
 0x224   : > { %v4479_v37 = vpop.eup %4478  ;;  %v1236_v39 = vadd.f32 1.0, %v4477_v36 }
 0x226   : > { %4484 = vrcp.f32 %v1236_v39 }
 0x229   : > { %v4481_v38 = vpop.eup %4480 }
 0x22a   : > { %v4483_v40 = vpop.eup %4482  ;;  %v1240_v41 = vmul.f32 %v4481_v38, %v4479_v37 }
 0x22b   : > { %v1239_v42 = vmul.f32 0.0, %v4483_v40 }
 0x22d   : > { %v5176_v43 = vadd.f32 %v1240_v41, %v1239_v42 }
 0x22f   : > { %4486 = vtanh.f32 %v5176_v43 }
 0x233   : > { %v4485_v44 = vpop.eup %4484 }
 0x23c   : > { %v4487_v45 = vpop.eup %4486 }
 0x23d   : > { %v1243_v46 = vmul.f32 %v4487_v45, %v4485_v44  ;;  %v1780_v44 = vld [vmem:[#allocation2 + $0xd0] sm:$0xff] }
 0x23f   : > { %1244 = vst.msk [vmem:[#allocation3] sm:$0xff] %vm926_vm3, %v1243_v46  ;;  %4110 = vmatmul.mubr.msk.f32.vlgmr.msra.gmra.mxu0 %vm926_vm3, %v1243_v46  ;;  %4121 = vmatmul.mubr.msk.f32.vlgmr.msra.gmra.mxu1 %vm926_vm3, %v1243_v46 }
 0x240   : > { %4124 = vmatpush3.msra.mxu0 %v5107_v5  ;;  %4135 = vmatpush3.msra.mxu1 %v5110_v6 }
 0x241   : > { %4125 = vmatprep.subr.mxu0 %v4711_v62  ;;  %4136 = vmatprep.subr.mxu1 %v4711_v62 }
 0x242   : > { %4126 = vmatpush3.msra.mxu0 %v5117_v7  ;;  %4137 = vmatpush3.msra.mxu1 %v5120_v8 }
 0x243   : > { %4127 = vmatprep.subr.mxu0 %v4711_v62  ;;  %4138 = vmatprep.subr.mxu1 %v4711_v62 }
 0x244   : > { %4128 = vmatpush3.msra.mxu0 %v5127_v9  ;;  %4139 = vmatpush3.msra.mxu1 %v5130_v10 }
 0x245   : > { %4129 = vmatprep.subr.mxu0 %v4711_v62  ;;  %4140 = vmatprep.subr.mxu1 %v4711_v62 }
 0x246   : > { %4130 = vmatpush3.msra.mxu0 %v5137_v11  ;;  %4131 = vmatprep.mubr.msk.f32.mxu0 %vm4712_vm2, %v4711_v62 }
 0x247   : > { %4141 = vmatpush3.msra.mxu1 %v5142_v12  ;;  %4142 = vmatprep.mubr.msk.f32.mxu1 %vm4712_vm2, %v4711_v62 }
 0x248   : > { %4132 = vmatmul.mubr.msk.f32.vlgmr.msra.gmra.mxu0 %vm926_vm3, %v1243_v46  ;;  %4143 = vmatmul.mubr.msk.f32.vlgmr.msra.gmra.mxu1 %vm926_vm3, %v1243_v46 }
 0x249   : > { %4145 = vmatprep.subr.mxu0 %v4711_v62  ;;  %4156 = vmatprep.subr.mxu1 %v4711_v62 }
 0x24a   : > { %4146 = vmatpush3.msra.mxu0 %v5063_v60  ;;  %4157 = vmatpush3.msra.mxu1 %v5066_v61 }
 0x24b   : > { %4147 = vmatprep.subr.mxu0 %v4711_v62  ;;  %4158 = vmatprep.subr.mxu1 %v4711_v62 }
 0x24c   : > { %4148 = vmatpush3.msra.mxu0 %v5071_v63  ;;  %4159 = vmatpush3.msra.mxu1 %v5074_v0 }
 0x24d   : > { %4149 = vmatprep.subr.mxu0 %v4711_v62  ;;  %4160 = vmatprep.subr.mxu1 %v4711_v62 }
 0x24e   : > { %4150 = vmatpush3.msra.mxu0 %v5081_v1  ;;  %4161 = vmatpush3.msra.mxu1 %v5084_v2 }
 0x24f   : > { %4151 = vmatprep.subr.mxu0 %v4711_v62  ;;  %4162 = vmatprep.subr.mxu1 %v4711_v62 }
 0x250   : > { %4152 = vmatpush3.msra.mxu0 %v5091_v3  ;;  %4163 = vmatpush3.msra.mxu1 %v5096_v4 }
 0x251   : > { %4153 = vmatprep.mubr.msk.f32.mxu0 %vm4712_vm2, %v4711_v62  ;;  %4164 = vmatprep.mubr.msk.f32.mxu1 %vm4712_vm2, %v4711_v62 }
 0x252   : > { %4167 = vmatprep.subr.mxu0 %v4711_v62  ;;  %4178 = vmatprep.subr.mxu1 %v4711_v62 }
 0x2ff   : > { %v1315_v49 = vpop.f32.mrf.mxu0  ;;  %v1387_v50 = vpop.f32.mrf.mxu1 }
 0x300   : > { %v1319_v51 = vadd.f32 %v1315_v49, %v1245_v47  ;;  %v1391_v52 = vadd.f32 %v1387_v50, %v1320_v48  ;;  %v1708_v50 = vld [vmem:[#allocation2 + $0x90] sm:$0xff] }
 0x301   : > { %v4111_v53 = vpop.f32.mrf.mxu0  ;;  %v4122_v54 = vpop.f32.mrf.mxu1 }
 0x302   : > { %v3710_v55 = vmul.f32 -1.442695, %v1319_v51  ;;  %v3711_v56 = vmul.f32 -1.442695, %v1391_v52 }
 0x304   : > { %4488 = vpow2.f32 %v3710_v55 }
 0x305   : > { %4490 = vpow2.f32 %v3711_v56 }
 0x308   : > { %v1459_v58 = vpop.f32.mrf.mxu0  ;;  %v1531_v59 = vpop.f32.mrf.mxu1 }
 0x309   : > { %v1535_v13 = vadd.f32 %v1531_v59, %v1464_v57  ;;  %v1463_v18 = vadd.f32 %v1459_v58, %v1392_v16 }
 0x30a   : > { %v4133_v14 = vpop.f32.mrf.mxu0  ;;  %v4144_v15 = vpop.f32.mrf.mxu1 }
 0x30b   : > { %v3712_v17 = vmul.f32 -1.442695, %v1535_v13 }
 0x30d   : > { %4492 = vpow2.f32 %v3712_v17 }
 0x30e   : > { %4494 = vtanh.f32 %v1463_v18 }
 0x311   : > { %v4489_v19 = vpop.eup %4488 }
 0x312   : > { %v4491_v20 = vpop.eup %4490  ;;  %v1539_v21 = vadd.f32 1.0, %v4489_v19 }
 0x313   : > { %v1545_v22 = vadd.f32 1.0, %v4491_v20 }
 0x314   : > { %4496 = vrcp.f32 %v1539_v21  ;;  %v1877_v21 = vld [vmem:[#allocation2 + $0x18] sm:$0xff] }
 0x315   : > { %4498 = vrcp.f32 %v1545_v22  ;;  %v1952_v22 = vld [vmem:[#allocation2 + $0x58] sm:$0xff] }
 0x31a   : > { %v4493_v23 = vpop.eup %4492 }
 0x31b   : > { %v4495_v24 = vpop.eup %4494  ;;  %v1552_v28 = vadd.f32 1.0, %v4493_v23 }
 0x31d   : > { %4500 = vrcp.f32 %v1552_v28 }
 0x321   : > { %v4497_v25 = vpop.eup %4496 }
 0x322   : > { %v4499_v26 = vpop.eup %4498  ;;  %v1556_v27 = vmul.f32 %v4497_v25, %v4495_v24 }
 0x323   : > { %v1555_v29 = vmul.f32 %v4499_v26, %v5176_v43 }
 0x325   : > { %v5225_v30 = vadd.f32 %v1556_v27, %v1555_v29 }
 0x327   : > { %4502 = vtanh.f32 %v5225_v30 }
 0x32a   : > { %v4501_v31 = vpop.eup %4500 }
 0x334   : > { %v4503_v32 = vpop.eup %4502 }
 0x335   : > { %v1559_v33 = vmul.f32 %v4503_v32, %v4501_v31  ;;  %v2096_v31 = vld [vmem:[#allocation2 + $0xd8] sm:$0xff] }
 0x337   : > { %1560 = vst.msk [vmem:[#allocation3 + $0x8] sm:$0xff] %vm926_vm3, %v1559_v33  ;;  %4154 = vmatmul.mubr.msk.f32.vlgmr.msra.gmra.mxu0 %vm926_vm3, %v1559_v33  ;;  %4165 = vmatmul.mubr.msk.f32.vlgmr.msra.gmra.mxu1 %vm926_vm3, %v1559_v33 }
 0x338   : > { %4168 = vmatpush3.msra.mxu0 %v5107_v5  ;;  %4179 = vmatpush3.msra.mxu1 %v5110_v6 }
 0x339   : > { %4169 = vmatprep.subr.mxu0 %v4711_v62  ;;  %4180 = vmatprep.subr.mxu1 %v4711_v62 }
 0x33a   : > { %4170 = vmatpush3.msra.mxu0 %v5117_v7  ;;  %4181 = vmatpush3.msra.mxu1 %v5120_v8 }
 0x33b   : > { %4171 = vmatprep.subr.mxu0 %v4711_v62  ;;  %4182 = vmatprep.subr.mxu1 %v4711_v62 }
 0x33c   : > { %4172 = vmatpush3.msra.mxu0 %v5127_v9  ;;  %4183 = vmatpush3.msra.mxu1 %v5130_v10 }
 0x33d   : > { %4173 = vmatprep.subr.mxu0 %v4711_v62  ;;  %4184 = vmatprep.subr.mxu1 %v4711_v62 }
 0x33e   : > { %4174 = vmatpush3.msra.mxu0 %v5137_v11  ;;  %4175 = vmatprep.mubr.msk.f32.mxu0 %vm4712_vm2, %v4711_v62 }
 0x33f   : > { %4185 = vmatpush3.msra.mxu1 %v5142_v12  ;;  %4186 = vmatprep.mubr.msk.f32.mxu1 %vm4712_vm2, %v4711_v62 }
 0x340   : > { %4176 = vmatmul.mubr.msk.f32.vlgmr.msra.gmra.mxu0 %vm926_vm3, %v1559_v33  ;;  %4187 = vmatmul.mubr.msk.f32.vlgmr.msra.gmra.mxu1 %vm926_vm3, %v1559_v33 }
 0x341   : > { %4189 = vmatprep.subr.mxu0 %v4711_v62  ;;  %4200 = vmatprep.subr.mxu1 %v4711_v62 }
 0x342   : > { %4190 = vmatpush3.msra.mxu0 %v5063_v60  ;;  %4201 = vmatpush3.msra.mxu1 %v5066_v61 }
 0x343   : > { %4191 = vmatprep.subr.mxu0 %v4711_v62  ;;  %4202 = vmatprep.subr.mxu1 %v4711_v62 }
 0x344   : > { %4192 = vmatpush3.msra.mxu0 %v5071_v63  ;;  %4203 = vmatpush3.msra.mxu1 %v5074_v0 }
 0x345   : > { %4193 = vmatprep.subr.mxu0 %v4711_v62  ;;  %4204 = vmatprep.subr.mxu1 %v4711_v62 }
 0x346   : > { %4194 = vmatpush3.msra.mxu0 %v5081_v1  ;;  %4205 = vmatpush3.msra.mxu1 %v5084_v2 }
 0x347   : > { %4195 = vmatprep.subr.mxu0 %v4711_v62  ;;  %4206 = vmatprep.subr.mxu1 %v4711_v62 }
 0x348   : > { %4196 = vmatpush3.msra.mxu0 %v5091_v3  ;;  %4207 = vmatpush3.msra.mxu1 %v5096_v4 }
 0x349   : > { %4197 = vmatprep.mubr.msk.f32.mxu0 %vm4712_vm2, %v4711_v62  ;;  %4208 = vmatprep.mubr.msk.f32.mxu1 %vm4712_vm2, %v4711_v62 }
 0x34a   : > { %4211 = vmatprep.subr.mxu0 %v4711_v62  ;;  %4222 = vmatprep.subr.mxu1 %v4711_v62 }
 0x3f7   : > { %v1631_v36 = vpop.f32.mrf.mxu0  ;;  %v1703_v37 = vpop.f32.mrf.mxu1 }
 0x3f8   : > { %v1635_v38 = vadd.f32 %v1631_v36, %v1561_v34  ;;  %v1707_v39 = vadd.f32 %v1703_v37, %v1636_v35  ;;  %v2024_v37 = vld [vmem:[#allocation2 + $0x98] sm:$0xff] }
 0x3f9   : > { %v4155_v40 = vpop.f32.mrf.mxu0  ;;  %v4166_v41 = vpop.f32.mrf.mxu1 }
 0x3fa   : > { %v3717_v42 = vmul.f32 -1.442695, %v1635_v38  ;;  %v3718_v43 = vmul.f32 -1.442695, %v1707_v39 }
 0x3fc   : > { %4504 = vpow2.f32 %v3717_v42 }
 0x3fd   : > { %4506 = vpow2.f32 %v3718_v43 }
 0x400   : > { %v1775_v45 = vpop.f32.mrf.mxu0  ;;  %v1847_v46 = vpop.f32.mrf.mxu1 }
 0x401   : > { %v1851_v47 = vadd.f32 %v1847_v46, %v1780_v44  ;;  %v1779_v52 = vadd.f32 %v1775_v45, %v1708_v50 }
 0x402   : > { %v4177_v48 = vpop.f32.mrf.mxu0  ;;  %v4188_v49 = vpop.f32.mrf.mxu1 }
 0x403   : > { %v3719_v51 = vmul.f32 -1.442695, %v1851_v47 }
 0x405   : > { %4508 = vpow2.f32 %v3719_v51 }
 0x406   : > { %4510 = vtanh.f32 %v1779_v52 }
 0x409   : > { %v4505_v53 = vpop.eup %4504 }
 0x40a   : > { %v4507_v54 = vpop.eup %4506  ;;  %v1855_v55 = vadd.f32 1.0, %v4505_v53 }
 0x40b   : > { %v1861_v56 = vadd.f32 1.0, %v4507_v54 }
 0x40c   : > { %4512 = vrcp.f32 %v1855_v55  ;;  %v2193_v55 = vld [vmem:[#allocation2 + $0x20] sm:$0xff] }
 0x40d   : > { %4514 = vrcp.f32 %v1861_v56  ;;  %v2268_v56 = vld [vmem:[#allocation2 + $0x60] sm:$0xff] }
 0x412   : > { %v4509_v57 = vpop.eup %4508 }
 0x413   : > { %v4511_v58 = vpop.eup %4510  ;;  %v1868_v15 = vadd.f32 1.0, %v4509_v57 }
 0x415   : > { %4516 = vrcp.f32 %v1868_v15 }
 0x419   : > { %v4513_v59 = vpop.eup %4512 }
 0x41a   : > { %v4515_v13 = vpop.eup %4514  ;;  %v1872_v14 = vmul.f32 %v4513_v59, %v4511_v58 }
 0x41b   : > { %v1871_v16 = vmul.f32 %v4515_v13, %v5225_v30 }
 0x41d   : > { %v5274_v17 = vadd.f32 %v1872_v14, %v1871_v16 }
 0x41f   : > { %4518 = vtanh.f32 %v5274_v17 }
 0x422   : > { %v4517_v18 = vpop.eup %4516 }
 0x42c   : > { %v4519_v19 = vpop.eup %4518 }
 0x42d   : > { %v1875_v20 = vmul.f32 %v4519_v19, %v4517_v18  ;;  %v2412_v18 = vld [vmem:[#allocation2 + $0xe0] sm:$0xff] }
 0x42f   : > { %1876 = vst.msk [vmem:[#allocation3 + $0x10] sm:$0xff] %vm926_vm3, %v1875_v20  ;;  %4198 = vmatmul.mubr.msk.f32.vlgmr.msra.gmra.mxu0 %vm926_vm3, %v1875_v20  ;;  %4209 = vmatmul.mubr.msk.f32.vlgmr.msra.gmra.mxu1 %vm926_vm3, %v1875_v20 }
 0x430   : > { %4212 = vmatpush3.msra.mxu0 %v5107_v5  ;;  %4223 = vmatpush3.msra.mxu1 %v5110_v6 }
 0x431   : > { %4213 = vmatprep.subr.mxu0 %v4711_v62  ;;  %4224 = vmatprep.subr.mxu1 %v4711_v62 }
 0x432   : > { %4214 = vmatpush3.msra.mxu0 %v5117_v7  ;;  %4225 = vmatpush3.msra.mxu1 %v5120_v8 }
 0x433   : > { %4215 = vmatprep.subr.mxu0 %v4711_v62  ;;  %4226 = vmatprep.subr.mxu1 %v4711_v62 }
 0x434   : > { %4216 = vmatpush3.msra.mxu0 %v5127_v9  ;;  %4227 = vmatpush3.msra.mxu1 %v5130_v10 }
 0x435   : > { %4217 = vmatprep.subr.mxu0 %v4711_v62  ;;  %4228 = vmatprep.subr.mxu1 %v4711_v62 }
 0x436   : > { %4218 = vmatpush3.msra.mxu0 %v5137_v11  ;;  %4219 = vmatprep.mubr.msk.f32.mxu0 %vm4712_vm2, %v4711_v62 }
 0x437   : > { %4229 = vmatpush3.msra.mxu1 %v5142_v12  ;;  %4230 = vmatprep.mubr.msk.f32.mxu1 %vm4712_vm2, %v4711_v62 }
 0x438   : > { %4220 = vmatmul.mubr.msk.f32.vlgmr.msra.gmra.mxu0 %vm926_vm3, %v1875_v20  ;;  %4231 = vmatmul.mubr.msk.f32.vlgmr.msra.gmra.mxu1 %vm926_vm3, %v1875_v20 }
 0x439   : > { %4233 = vmatprep.subr.mxu0 %v4711_v62  ;;  %4244 = vmatprep.subr.mxu1 %v4711_v62 }
 0x43a   : > { %4234 = vmatpush3.msra.mxu0 %v5063_v60  ;;  %4245 = vmatpush3.msra.mxu1 %v5066_v61 }
 0x43b   : > { %4235 = vmatprep.subr.mxu0 %v4711_v62  ;;  %4246 = vmatprep.subr.mxu1 %v4711_v62 }
 0x43c   : > { %4236 = vmatpush3.msra.mxu0 %v5071_v63  ;;  %4247 = vmatpush3.msra.mxu1 %v5074_v0 }
 0x43d   : > { %4237 = vmatprep.subr.mxu0 %v4711_v62  ;;  %4248 = vmatprep.subr.mxu1 %v4711_v62 }
 0x43e   : > { %4238 = vmatpush3.msra.mxu0 %v5081_v1  ;;  %4249 = vmatpush3.msra.mxu1 %v5084_v2 }
 0x43f   : > { %4239 = vmatprep.subr.mxu0 %v4711_v62  ;;  %4250 = vmatprep.subr.mxu1 %v4711_v62 }
 0x440   : > { %4240 = vmatpush3.msra.mxu0 %v5091_v3  ;;  %4251 = vmatpush3.msra.mxu1 %v5096_v4 }
 0x441   : > { %4241 = vmatprep.mubr.msk.f32.mxu0 %vm4712_vm2, %v4711_v62  ;;  %4252 = vmatprep.mubr.msk.f32.mxu1 %vm4712_vm2, %v4711_v62 }
 0x442   : > { %4255 = vmatprep.subr.mxu0 %v4711_v62  ;;  %4266 = vmatprep.subr.mxu1 %v4711_v62 }
 0x4ef   : > { %v1947_v23 = vpop.f32.mrf.mxu0  ;;  %v2019_v24 = vpop.f32.mrf.mxu1 }
 0x4f0   : > { %v1951_v25 = vadd.f32 %v1947_v23, %v1877_v21  ;;  %v2023_v26 = vadd.f32 %v2019_v24, %v1952_v22  ;;  %v2340_v24 = vld [vmem:[#allocation2 + $0xa0] sm:$0xff] }
 0x4f1   : > { %v4199_v27 = vpop.f32.mrf.mxu0  ;;  %v4210_v28 = vpop.f32.mrf.mxu1 }
 0x4f2   : > { %v3724_v29 = vmul.f32 -1.442695, %v1951_v25  ;;  %v3725_v30 = vmul.f32 -1.442695, %v2023_v26 }
 0x4f4   : > { %4520 = vpow2.f32 %v3724_v29 }
 0x4f5   : > { %4522 = vpow2.f32 %v3725_v30 }
 0x4f8   : > { %v2091_v32 = vpop.f32.mrf.mxu0  ;;  %v2163_v33 = vpop.f32.mrf.mxu1 }
 0x4f9   : > { %v2167_v34 = vadd.f32 %v2163_v33, %v2096_v31  ;;  %v2095_v39 = vadd.f32 %v2091_v32, %v2024_v37 }
 0x4fa   : > { %v4221_v35 = vpop.f32.mrf.mxu0  ;;  %v4232_v36 = vpop.f32.mrf.mxu1 }
 0x4fb   : > { %v3726_v38 = vmul.f32 -1.442695, %v2167_v34 }
 0x4fd   : > { %4524 = vpow2.f32 %v3726_v38 }
 0x4fe   : > { %4526 = vtanh.f32 %v2095_v39 }
 0x501   : > { %v4521_v40 = vpop.eup %4520 }
 0x502   : > { %v4523_v41 = vpop.eup %4522  ;;  %v2171_v42 = vadd.f32 1.0, %v4521_v40 }
 0x503   : > { %v2177_v43 = vadd.f32 1.0, %v4523_v41 }
 0x504   : > { %4528 = vrcp.f32 %v2171_v42 }
 0x505   : > { %4530 = vrcp.f32 %v2177_v43 }
 0x50a   : > { %v4525_v44 = vpop.eup %4524 }
 0x50b   : > { %v4527_v45 = vpop.eup %4526  ;;  %v2184_v49 = vadd.f32 1.0, %v4525_v44  ;;  %v2728_v44 = vld [vmem:[#allocation2 + $0xe8] sm:$0xff] }
 0x50d   : > { %4532 = vrcp.f32 %v2184_v49 }
 0x511   : > { %v4529_v46 = vpop.eup %4528 }
 0x512   : > { %v4531_v47 = vpop.eup %4530  ;;  %v2188_v48 = vmul.f32 %v4529_v46, %v4527_v45 }
 0x513   : > { %v2187_v50 = vmul.f32 %v4531_v47, %v5274_v17 }
 0x515   : > { %v5323_v51 = vadd.f32 %v2188_v48, %v2187_v50  ;;  %v2656_v50 = vld [vmem:[#allocation2 + $0xa8] sm:$0xff] }
 0x517   : > { %4534 = vtanh.f32 %v5323_v51 }
 0x51a   : > { %v4533_v52 = vpop.eup %4532 }
 0x524   : > { %v4535_v53 = vpop.eup %4534 }
 0x525   : > { %v2191_v54 = vmul.f32 %v4535_v53, %v4533_v52 }
 0x527   : > { %2192 = vst.msk [vmem:[#allocation3 + $0x18] sm:$0xff] %vm926_vm3, %v2191_v54  ;;  %4242 = vmatmul.mubr.msk.f32.vlgmr.msra.gmra.mxu0 %vm926_vm3, %v2191_v54  ;;  %4253 = vmatmul.mubr.msk.f32.vlgmr.msra.gmra.mxu1 %vm926_vm3, %v2191_v54 }
 0x528   : > { %4256 = vmatpush3.msra.mxu0 %v5107_v5  ;;  %4267 = vmatpush3.msra.mxu1 %v5110_v6 }
 0x529   : > { %4257 = vmatprep.subr.mxu0 %v4711_v62  ;;  %4268 = vmatprep.subr.mxu1 %v4711_v62 }
 0x52a   : > { %4258 = vmatpush3.msra.mxu0 %v5117_v7  ;;  %4269 = vmatpush3.msra.mxu1 %v5120_v8 }
 0x52b   : > { %4259 = vmatprep.subr.mxu0 %v4711_v62  ;;  %4270 = vmatprep.subr.mxu1 %v4711_v62 }
 0x52c   : > { %4260 = vmatpush3.msra.mxu0 %v5127_v9  ;;  %4271 = vmatpush3.msra.mxu1 %v5130_v10 }
 0x52d   : > { %4261 = vmatprep.subr.mxu0 %v4711_v62  ;;  %4272 = vmatprep.subr.mxu1 %v4711_v62 }
 0x52e   : > { %4262 = vmatpush3.msra.mxu0 %v5137_v11  ;;  %4263 = vmatprep.mubr.msk.f32.mxu0 %vm4712_vm2, %v4711_v62 }
 0x52f   : > { %4273 = vmatpush3.msra.mxu1 %v5142_v12  ;;  %4274 = vmatprep.mubr.msk.f32.mxu1 %vm4712_vm2, %v4711_v62 }
 0x530   : > { %4264 = vmatmul.mubr.msk.f32.vlgmr.msra.gmra.mxu0 %vm926_vm3, %v2191_v54  ;;  %4275 = vmatmul.mubr.msk.f32.vlgmr.msra.gmra.mxu1 %vm926_vm3, %v2191_v54 }
 0x531   : > { %4277 = vmatprep.subr.mxu0 %v4711_v62  ;;  %4288 = vmatprep.subr.mxu1 %v4711_v62 }
 0x532   : > { %4278 = vmatpush3.msra.mxu0 %v5063_v60  ;;  %4289 = vmatpush3.msra.mxu1 %v5066_v61 }
 0x533   : > { %4279 = vmatprep.subr.mxu0 %v4711_v62  ;;  %4290 = vmatprep.subr.mxu1 %v4711_v62 }
 0x534   : > { %4280 = vmatpush3.msra.mxu0 %v5071_v63  ;;  %4291 = vmatpush3.msra.mxu1 %v5074_v0 }
 0x535   : > { %4281 = vmatprep.subr.mxu0 %v4711_v62  ;;  %4292 = vmatprep.subr.mxu1 %v4711_v62 }
 0x536   : > { %4282 = vmatpush3.msra.mxu0 %v5081_v1  ;;  %4293 = vmatpush3.msra.mxu1 %v5084_v2 }
 0x537   : > { %4283 = vmatprep.subr.mxu0 %v4711_v62  ;;  %4294 = vmatprep.subr.mxu1 %v4711_v62 }
 0x538   : > { %4284 = vmatpush3.msra.mxu0 %v5091_v3  ;;  %4295 = vmatpush3.msra.mxu1 %v5096_v4 }
 0x539   : > { %4285 = vmatprep.mubr.msk.f32.mxu0 %vm4712_vm2, %v4711_v62  ;;  %4296 = vmatprep.mubr.msk.f32.mxu1 %vm4712_vm2, %v4711_v62 }
 0x53a   : > { %4299 = vmatprep.subr.mxu0 %v4711_v62  ;;  %4310 = vmatprep.subr.mxu1 %v4711_v62 }
 0x5e7   : > { %v2263_v57 = vpop.f32.mrf.mxu0  ;;  %v2335_v58 = vpop.f32.mrf.mxu1 }
 0x5e8   : > { %v2267_v59 = vadd.f32 %v2263_v57, %v2193_v55  ;;  %v2339_v13 = vadd.f32 %v2335_v58, %v2268_v56 }
 0x5e9   : > { %v4243_v14 = vpop.f32.mrf.mxu0  ;;  %v4254_v15 = vpop.f32.mrf.mxu1 }
 0x5ea   : > { %v3731_v16 = vmul.f32 -1.442695, %v2267_v59  ;;  %v3732_v17 = vmul.f32 -1.442695, %v2339_v13 }
 0x5ec   : > { %4536 = vpow2.f32 %v3731_v16 }
 0x5ed   : > { %4538 = vpow2.f32 %v3732_v17 }
 0x5f0   : > { %v2407_v19 = vpop.f32.mrf.mxu0  ;;  %v2479_v20 = vpop.f32.mrf.mxu1 }
 0x5f1   : > { %v2483_v21 = vadd.f32 %v2479_v20, %v2412_v18  ;;  %v2411_v26 = vadd.f32 %v2407_v19, %v2340_v24 }
 0x5f2   : > { %v4265_v22 = vpop.f32.mrf.mxu0  ;;  %v4276_v23 = vpop.f32.mrf.mxu1 }
 0x5f3   : > { %v3733_v25 = vmul.f32 -1.442695, %v2483_v21  ;;  %v2825_v21 = vld [vmem:[#allocation2 + $0x30] sm:$0xff] }
 0x5f4   : > { %v2900_v22 = vld [vmem:[#allocation2 + $0x70] sm:$0xff] }
 0x5f5   : > { %4540 = vpow2.f32 %v3733_v25 }
 0x5f6   : > { %4542 = vtanh.f32 %v2411_v26 }
 0x5f9   : > { %v4537_v27 = vpop.eup %4536 }
 0x5fa   : > { %v4539_v28 = vpop.eup %4538  ;;  %v2487_v29 = vadd.f32 1.0, %v4537_v27 }
 0x5fb   : > { %v2493_v30 = vadd.f32 1.0, %v4539_v28 }
 0x5fc   : > { %4544 = vrcp.f32 %v2487_v29 }
 0x5fd   : > { %4546 = vrcp.f32 %v2493_v30 }
 0x602   : > { %v4541_v31 = vpop.eup %4540 }
 0x603   : > { %v4543_v32 = vpop.eup %4542  ;;  %v2500_v36 = vadd.f32 1.0, %v4541_v31  ;;  %v3044_v31 = vld [vmem:[#allocation2 + $0xf0] sm:$0xff] }
 0x605   : > { %4548 = vrcp.f32 %v2500_v36 }
 0x609   : > { %v4545_v33 = vpop.eup %4544 }
 0x60a   : > { %v4547_v34 = vpop.eup %4546  ;;  %v2504_v35 = vmul.f32 %v4545_v33, %v4543_v32 }
 0x60b   : > { %v2503_v37 = vmul.f32 %v4547_v34, %v5323_v51 }
 0x60d   : > { %v5372_v38 = vadd.f32 %v2504_v35, %v2503_v37  ;;  %v2972_v37 = vld [vmem:[#allocation2 + $0xb0] sm:$0xff] }
 0x60f   : > { %4550 = vtanh.f32 %v5372_v38 }
 0x612   : > { %v4549_v39 = vpop.eup %4548 }
 0x61c   : > { %v4551_v40 = vpop.eup %4550 }
 0x61d   : > { %v2507_v41 = vmul.f32 %v4551_v40, %v4549_v39 }
 0x61f   : > { %2508 = vst.msk [vmem:[#allocation3 + $0x20] sm:$0xff] %vm926_vm3, %v2507_v41  ;;  %4286 = vmatmul.mubr.msk.f32.vlgmr.msra.gmra.mxu0 %vm926_vm3, %v2507_v41  ;;  %4297 = vmatmul.mubr.msk.f32.vlgmr.msra.gmra.mxu1 %vm926_vm3, %v2507_v41 }
 0x620   : > { %4300 = vmatpush3.msra.mxu0 %v5107_v5  ;;  %4311 = vmatpush3.msra.mxu1 %v5110_v6 }
 0x621   : > { %4301 = vmatprep.subr.mxu0 %v4711_v62  ;;  %4312 = vmatprep.subr.mxu1 %v4711_v62 }
 0x622   : > { %4302 = vmatpush3.msra.mxu0 %v5117_v7  ;;  %4313 = vmatpush3.msra.mxu1 %v5120_v8 }
 0x623   : > { %4303 = vmatprep.subr.mxu0 %v4711_v62  ;;  %4314 = vmatprep.subr.mxu1 %v4711_v62 }
 0x624   : > { %4304 = vmatpush3.msra.mxu0 %v5127_v9  ;;  %4315 = vmatpush3.msra.mxu1 %v5130_v10 }
 0x625   : > { %4305 = vmatprep.subr.mxu0 %v4711_v62  ;;  %4316 = vmatprep.subr.mxu1 %v4711_v62 }
 0x626   : > { %4306 = vmatpush3.msra.mxu0 %v5137_v11  ;;  %4307 = vmatprep.mubr.msk.f32.mxu0 %vm4712_vm2, %v4711_v62 }
 0x627   : > { %4317 = vmatpush3.msra.mxu1 %v5142_v12  ;;  %4318 = vmatprep.mubr.msk.f32.mxu1 %vm4712_vm2, %v4711_v62 }
 0x628   : > { %4308 = vmatmul.mubr.msk.f32.vlgmr.msra.gmra.mxu0 %vm926_vm3, %v2507_v41  ;;  %4319 = vmatmul.mubr.msk.f32.vlgmr.msra.gmra.mxu1 %vm926_vm3, %v2507_v41 }
 0x629   : > { %4321 = vmatprep.subr.mxu0 %v4711_v62  ;;  %4332 = vmatprep.subr.mxu1 %v4711_v62 }
 0x62a   : > { %4322 = vmatpush3.msra.mxu0 %v5063_v60  ;;  %4333 = vmatpush3.msra.mxu1 %v5066_v61  ;;  %v2509_v60 = vld [vmem:[#allocation2 + $0x28] sm:$0xff] }
 0x62b   : > { %4323 = vmatprep.subr.mxu0 %v4711_v62  ;;  %4334 = vmatprep.subr.mxu1 %v4711_v62  ;;  %v2584_v61 = vld [vmem:[#allocation2 + $0x68] sm:$0xff] }
 0x62c   : > { %4324 = vmatpush3.msra.mxu0 %v5071_v63  ;;  %4335 = vmatpush3.msra.mxu1 %v5074_v0 }
 0x62d   : > { %4325 = vmatprep.subr.mxu0 %v4711_v62  ;;  %4336 = vmatprep.subr.mxu1 %v4711_v62 }
 0x62e   : > { %4326 = vmatpush3.msra.mxu0 %v5081_v1  ;;  %4337 = vmatpush3.msra.mxu1 %v5084_v2 }
 0x62f   : > { %4327 = vmatprep.subr.mxu0 %v4711_v62  ;;  %4338 = vmatprep.subr.mxu1 %v4711_v62 }
 0x630   : > { %4328 = vmatpush3.msra.mxu0 %v5091_v3  ;;  %4339 = vmatpush3.msra.mxu1 %v5096_v4 }
 0x631   : > { %4329 = vmatprep.mubr.msk.f32.mxu0 %vm4712_vm2, %v4711_v62  ;;  %4340 = vmatprep.mubr.msk.f32.mxu1 %vm4712_vm2, %v4711_v62 }
 0x632   : > { %4343 = vmatprep.subr.mxu0 %v4711_v62  ;;  %4354 = vmatprep.subr.mxu1 %v4711_v62 }
 0x6df   : > { %v2579_v63 = vpop.f32.mrf.mxu0  ;;  %v2651_v0 = vpop.f32.mrf.mxu1 }
 0x6e0   : > { %v2583_v1 = vadd.f32 %v2579_v63, %v2509_v60  ;;  %v2655_v2 = vadd.f32 %v2651_v0, %v2584_v61 }
 0x6e1   : > { %v4287_v42 = vpop.f32.mrf.mxu0  ;;  %v4298_v3 = vpop.f32.mrf.mxu1 }
 0x6e2   : > { %v3738_v43 = vmul.f32 -1.442695, %v2583_v1  ;;  %v3739_v4 = vmul.f32 -1.442695, %v2655_v2 }
 0x6e4   : > { %4552 = vpow2.f32 %v3738_v43 }
 0x6e5   : > { %4554 = vpow2.f32 %v3739_v4 }
 0x6e8   : > { %v2723_v45 = vpop.f32.mrf.mxu0  ;;  %v2795_v46 = vpop.f32.mrf.mxu1 }
 0x6e9   : > { %v2799_v47 = vadd.f32 %v2795_v46, %v2728_v44  ;;  %v2727_v52 = vadd.f32 %v2723_v45, %v2656_v50  ;;  %v4611_v50 = vld [vmem:[%s4830_s19 + $0x70] sm:$0xff] }
 0x6ea   : > { %v4309_v48 = vpop.f32.mrf.mxu0  ;;  %v4320_v49 = vpop.f32.mrf.mxu1 }
 0x6eb   : > { %v3740_v51 = vmul.f32 -1.442695, %v2799_v47  ;;  %v4608_v47 = vld [vmem:[%s4830_s19 + $0x58] sm:$0xff]  ;;  %v4610_v49 = vld [vmem:[%s4830_s19 + $0x50] sm:$0xff] }
 0x6ec   : > { %v4609_v48 = vld [vmem:[%s4830_s19 + $0x78] sm:$0xff] }
 0x6ed   : > { %4556 = vpow2.f32 %v3740_v51  ;;  %v4612_v51 = vld [vmem:[%s4830_s19 + $0x48] sm:$0xff] }
 0x6ee   : > { %4558 = vtanh.f32 %v2727_v52  ;;  %v4613_v52 = vld [vmem:[%s4830_s19 + $0x68] sm:$0xff] }
 0x6f1   : > { %v4553_v53 = vpop.eup %4552 }
 0x6f2   : > { %v4555_v54 = vpop.eup %4554  ;;  %v2803_v55 = vadd.f32 1.0, %v4553_v53  ;;  %v4614_v53 = vld [vmem:[%s4830_s19 + $0x40] sm:$0xff] }
 0x6f3   : > { %v2809_v56 = vadd.f32 1.0, %v4555_v54  ;;  %v4615_v54 = vld [vmem:[%s4830_s19 + $0x60] sm:$0xff] }
 0x6f4   : > { %4560 = vrcp.f32 %v2803_v55  ;;  %v3141_v55 = vld [vmem:[#allocation2 + $0x38] sm:$0xff] }
 0x6f5   : > { %4562 = vrcp.f32 %v2809_v56  ;;  %v3216_v56 = vld [vmem:[#allocation2 + $0x78] sm:$0xff] }
 0x6fa   : > { %v4557_v57 = vpop.eup %4556 }
 0x6fb   : > { %v4559_v58 = vpop.eup %4558  ;;  %v2816_v15 = vadd.f32 1.0, %v4557_v57 }
 0x6fd   : > { %4564 = vrcp.f32 %v2816_v15 }
 0x701   : > { %v4561_v59 = vpop.eup %4560 }
 0x702   : > { %v4563_v13 = vpop.eup %4562  ;;  %v2820_v14 = vmul.f32 %v4561_v59, %v4559_v58 }
 0x703   : > { %v2819_v16 = vmul.f32 %v4563_v13, %v5372_v38 }
 0x705   : > { %v5421_v17 = vadd.f32 %v2820_v14, %v2819_v16 }
 0x707   : > { %4566 = vtanh.f32 %v5421_v17 }
 0x70a   : > { %v4565_v18 = vpop.eup %4564 }
 0x714   : > { %v4567_v19 = vpop.eup %4566 }
 0x715   : > { %v2823_v20 = vmul.f32 %v4567_v19, %v4565_v18  ;;  %v3360_v18 = vld [vmem:[#allocation2 + $0xf8] sm:$0xff] }
 0x717   : > { %2824 = vst.msk [vmem:[#allocation3 + $0x28] sm:$0xff] %vm926_vm3, %v2823_v20  ;;  %4330 = vmatmul.mubr.msk.f32.vlgmr.msra.gmra.mxu0 %vm926_vm3, %v2823_v20  ;;  %4341 = vmatmul.mubr.msk.f32.vlgmr.msra.gmra.mxu1 %vm926_vm3, %v2823_v20 }
 0x718   : > { %4344 = vmatpush3.msra.mxu0 %v5107_v5  ;;  %4355 = vmatpush3.msra.mxu1 %v5110_v6  ;;  %v4600_v5 = vld [vmem:[%s4830_s19 + $0x18] sm:$0xff] }
 0x719   : > { %4345 = vmatprep.subr.mxu0 %v4711_v62  ;;  %4356 = vmatprep.subr.mxu1 %v4711_v62  ;;  %v4601_v6 = vld [vmem:[%s4830_s19 + $0x38] sm:$0xff] }
 0x71a   : > { %4346 = vmatpush3.msra.mxu0 %v5117_v7  ;;  %4357 = vmatpush3.msra.mxu1 %v5120_v8  ;;  %v4602_v7 = vld [vmem:[%s4830_s19 + $0x10] sm:$0xff] }
 0x71b   : > { %4347 = vmatprep.subr.mxu0 %v4711_v62  ;;  %4358 = vmatprep.subr.mxu1 %v4711_v62  ;;  %v4603_v8 = vld [vmem:[%s4830_s19 + $0x30] sm:$0xff] }
 0x71c   : > { %4348 = vmatpush3.msra.mxu0 %v5127_v9  ;;  %4359 = vmatpush3.msra.mxu1 %v5130_v10  ;;  %v4604_v9 = vld [vmem:[%s4830_s19 + $0x8] sm:$0xff] }
 0x71d   : > { %4349 = vmatprep.subr.mxu0 %v4711_v62  ;;  %4360 = vmatprep.subr.mxu1 %v4711_v62  ;;  %v4605_v10 = vld [vmem:[%s4830_s19 + $0x28] sm:$0xff] }
 0x71e   : > { %4350 = vmatpush3.msra.mxu0 %v5137_v11  ;;  %4351 = vmatprep.mubr.msk.f32.mxu0 %vm4712_vm2, %v4711_v62  ;;  %v4606_v11 = vld [vmem:[%s4830_s19] sm:$0xff] }
 0x71f   : > { %4361 = vmatpush3.msra.mxu1 %v5142_v12  ;;  %4362 = vmatprep.mubr.msk.f32.mxu1 %vm4712_vm2, %v4711_v62  ;;  %v4607_v12 = vld [vmem:[%s4830_s19 + $0x20] sm:$0xff] }
 0x720   : > { %4352 = vmatmul.mubr.msk.f32.vlgmr.msra.gmra.mxu0 %vm926_vm3, %v2823_v20  ;;  %4363 = vmatmul.mubr.msk.f32.vlgmr.msra.gmra.mxu1 %vm926_vm3, %v2823_v20 }
 0x721   : > { %4365 = vmatprep.subr.mxu0 %v4711_v62  ;;  %4376 = vmatprep.subr.mxu1 %v4711_v62 }
 0x722   : > { %4366 = vmatpush3.msra.mxu0 %v4600_v5  ;;  %4377 = vmatpush3.msra.mxu1 %v4601_v6 }
 0x723   : > { %4367 = vmatprep.subr.mxu0 %v4711_v62  ;;  %4378 = vmatprep.subr.mxu1 %v4711_v62 }
 0x724   : > { %4368 = vmatpush3.msra.mxu0 %v4602_v7  ;;  %4379 = vmatpush3.msra.mxu1 %v4603_v8  ;;  %v3288_v7 = vld [vmem:[#allocation2 + $0xb8] sm:$0xff] }
 0x725   : > { %4369 = vmatprep.subr.mxu0 %v4711_v62  ;;  %4380 = vmatprep.subr.mxu1 %v4711_v62 }
 0x726   : > { %4370 = vmatpush3.msra.mxu0 %v4604_v9  ;;  %4381 = vmatpush3.msra.mxu1 %v4605_v10 }
 0x727   : > { %4371 = vmatprep.subr.mxu0 %v4711_v62  ;;  %4382 = vmatprep.subr.mxu1 %v4711_v62 }
 0x728   : > { %4372 = vmatpush3.msra.mxu0 %v4606_v11  ;;  %4383 = vmatpush3.msra.mxu1 %v4607_v12 }
 0x729   : > { %4373 = vmatprep.mubr.msk.f32.mxu0 %vm4712_vm2, %v4711_v62  ;;  %4384 = vmatprep.mubr.msk.f32.mxu1 %vm4712_vm2, %v4711_v62 }
 0x72a   : > { %4387 = vmatprep.subr.mxu0 %v4711_v62  ;;  %4398 = vmatprep.subr.mxu1 %v4711_v62 }
 0x7d7   : > { %v2895_v23 = vpop.f32.mrf.mxu0  ;;  %v2967_v24 = vpop.f32.mrf.mxu1 }
 0x7d8   : > { %v2899_v25 = vadd.f32 %v2895_v23, %v2825_v21  ;;  %v2971_v26 = vadd.f32 %v2967_v24, %v2900_v22 }
 0x7d9   : > { %v4331_v27 = vpop.f32.mrf.mxu0  ;;  %v4342_v28 = vpop.f32.mrf.mxu1 }
 0x7da   : > { %v3745_v29 = vmul.f32 -1.442695, %v2899_v25  ;;  %v3746_v30 = vmul.f32 -1.442695, %v2971_v26 }
 0x7dc   : > { %4568 = vpow2.f32 %v3745_v29 }
 0x7dd   : > { %4570 = vpow2.f32 %v3746_v30 }
 0x7e0   : > { %v3039_v32 = vpop.f32.mrf.mxu0  ;;  %v3111_v33 = vpop.f32.mrf.mxu1 }
 0x7e1   : > { %v3115_v34 = vadd.f32 %v3111_v33, %v3044_v31  ;;  %v3043_v39 = vadd.f32 %v3039_v32, %v2972_v37 }
 0x7e2   : > { %v4353_v35 = vpop.f32.mrf.mxu0  ;;  %v4364_v36 = vpop.f32.mrf.mxu1 }
 0x7e3   : > { %v3747_v38 = vmul.f32 -1.442695, %v3115_v34 }
 0x7e5   : > { %4572 = vpow2.f32 %v3747_v38 }
 0x7e6   : > { %4574 = vtanh.f32 %v3043_v39 }
 0x7e9   : > { %v4569_v40 = vpop.eup %4568 }
 0x7ea   : > { %v4571_v41 = vpop.eup %4570  ;;  %v3119_v60 = vadd.f32 1.0, %v4569_v40 }
 0x7eb   : > { %v3125_v61 = vadd.f32 1.0, %v4571_v41 }
 0x7ec   : > { %4576 = vrcp.f32 %v3119_v60 }
 0x7ed   : > { %4578 = vrcp.f32 %v3125_v61 }
 0x7f2   : > { %v4573_v63 = vpop.eup %4572 }
 0x7f3   : > { %v4575_v0 = vpop.eup %4574  ;;  %v3132_v3 = vadd.f32 1.0, %v4573_v63 }
 0x7f5   : > { %4580 = vrcp.f32 %v3132_v3 }
 0x7f9   : > { %v4577_v1 = vpop.eup %4576 }
 0x7fa   : > { %v4579_v2 = vpop.eup %4578  ;;  %v3136_v42 = vmul.f32 %v4577_v1, %v4575_v0 }
 0x7fb   : > { %v3135_v43 = vmul.f32 %v4579_v2, %v5421_v17 }
 0x7fd   : > { %v5470_v4 = vadd.f32 %v3136_v42, %v3135_v43 }
 0x7ff   : > { %4582 = vtanh.f32 %v5470_v4 }
 0x802   : > { %v4581_v44 = vpop.eup %4580 }
 0x80c   : > { %v4583_v45 = vpop.eup %4582 }
 0x80d   : > { %v3139_v46 = vmul.f32 %v4583_v45, %v4581_v44 }
 0x80f   : > { %3140 = vst.msk [vmem:[#allocation3 + $0x30] sm:$0xff] %vm926_vm3, %v3139_v46  ;;  %4374 = vmatmul.mubr.msk.f32.vlgmr.msra.gmra.mxu0 %vm926_vm3, %v3139_v46  ;;  %4385 = vmatmul.mubr.msk.f32.vlgmr.msra.gmra.mxu1 %vm926_vm3, %v3139_v46 }
 0x810   : > { %4388 = vmatpush3.msra.mxu0 %v4608_v47  ;;  %4399 = vmatpush3.msra.mxu1 %v4609_v48 }
 0x811   : > { %4389 = vmatprep.subr.mxu0 %v4711_v62  ;;  %4400 = vmatprep.subr.mxu1 %v4711_v62 }
 0x812   : > { %4390 = vmatpush3.msra.mxu0 %v4610_v49  ;;  %4401 = vmatpush3.msra.mxu1 %v4611_v50 }
 0x813   : > { %4391 = vmatprep.subr.mxu0 %v4711_v62  ;;  %4402 = vmatprep.subr.mxu1 %v4711_v62 }
 0x814   : > { %4392 = vmatpush3.msra.mxu0 %v4612_v51  ;;  %4403 = vmatpush3.msra.mxu1 %v4613_v52 }
 0x815   : > { %4393 = vmatprep.subr.mxu0 %v4711_v62  ;;  %4404 = vmatprep.subr.mxu1 %v4711_v62 }
 0x816   : > { %4394 = vmatpush3.msra.mxu0 %v4614_v53  ;;  %4395 = vmatprep.mubr.msk.f32.mxu0 %vm4712_vm2, %v4711_v62 }
 0x817   : > { %4405 = vmatpush3.msra.mxu1 %v4615_v54  ;;  %4406 = vmatprep.mubr.msk.f32.mxu1 %vm4712_vm2, %v4711_v62 }
 0x818   : > { %4396 = vmatmul.mubr.msk.f32.vlgmr.msra.gmra.mxu0 %vm926_vm3, %v3139_v46  ;;  %4407 = vmatmul.mubr.msk.f32.vlgmr.msra.gmra.mxu1 %vm926_vm3, %v3139_v46 }
 0x8cf   : > { %v3211_v57 = vpop.f32.mrf.mxu0  ;;  %v3283_v58 = vpop.f32.mrf.mxu1 }
 0x8d0   : > { %v3215_v59 = vadd.f32 %v3211_v57, %v3141_v55  ;;  %v3287_v13 = vadd.f32 %v3283_v58, %v3216_v56 }
 0x8d1   : > { %v4375_v14 = vpop.f32.mrf.mxu0  ;;  %v4386_v15 = vpop.f32.mrf.mxu1 }
 0x8d2   : > { %v3752_v16 = vmul.f32 -1.442695, %v3215_v59  ;;  %v3753_v17 = vmul.f32 -1.442695, %v3287_v13 }
 0x8d4   : > { %4584 = vpow2.f32 %v3752_v16 }
 0x8d5   : > { %4586 = vpow2.f32 %v3753_v17 }
 0x8d8   : > { %v3355_v19 = vpop.f32.mrf.mxu0  ;;  %v3427_v20 = vpop.f32.mrf.mxu1 }
 0x8d9   : > { %v3431_v62 = vadd.f32 %v3427_v20, %v3360_v18  ;;  %v3359_v9 = vadd.f32 %v3355_v19, %v3288_v7 }
 0x8da   : > { %v4397_v5 = vpop.f32.mrf.mxu0  ;;  %v4408_v6 = vpop.f32.mrf.mxu1 }
 0x8db   : > { %v3754_v8 = vmul.f32 -1.442695, %v3431_v62 }
 0x8dd   : > { %4588 = vpow2.f32 %v3754_v8 }
 0x8de   : > { %4590 = vtanh.f32 %v3359_v9 }
 0x8e1   : > { %v4585_v10 = vpop.eup %4584 }
 0x8e2   : > { %v4587_v11 = vpop.eup %4586  ;;  %v3435_v12 = vadd.f32 1.0, %v4585_v10 }
 0x8e3   : > { %v3441_v21 = vadd.f32 1.0, %v4587_v11 }
 0x8e4   : > { %4592 = vrcp.f32 %v3435_v12 }
 0x8e5   : > { %4594 = vrcp.f32 %v3441_v21 }
 0x8ea   : > { %v4589_v22 = vpop.eup %4588 }
 0x8eb   : > { %v4591_v23 = vpop.eup %4590  ;;  %v3448_v27 = vadd.f32 1.0, %v4589_v22 }
 0x8ed   : > { %4596 = vrcp.f32 %v3448_v27 }
 0x8f1   : > { %v4593_v24 = vpop.eup %4592 }
 0x8f2   : > { %v4595_v25 = vpop.eup %4594  ;;  %v3452_v26 = vmul.f32 %v4593_v24, %v4591_v23 }
 0x8f3   : > { %v3451_v28 = vmul.f32 %v4595_v25, %v5470_v4 }
 0x8f5   : > { %v3453_v29 = vadd.f32 %v3452_v26, %v3451_v28 }
 0x8f7   : > { %4598 = vtanh.f32 %v3453_v29 }
 0x8fa   : > { %v4597_v30 = vpop.eup %4596 }
 0x903   : > { %3460 = sbr.rel (%p3755_p2) target bundleno = 2517 (0x9d5), region = 60 }
 0x904   : > { %v4599_v31 = vpop.eup %4598 }
 0x905   : > { %v3455_v32 = vmul.f32 %v4599_v31, %v4597_v30 }
 0x907   : > { %3456 = vst.msk [vmem:[#allocation3 + $0x38] sm:$0xff] %vm926_vm3, %v3455_v32 }
 0x908   : > { %v3464_v33 = vld [vmem:[%s5544_s4 + $0x18] sm:$0xff]  ;;  %v4713_v34 = vmov 0.0   ;;  %v3463_v35 = vld [vmem:[%s5544_s4 + $0x10] sm:$0xff]  ;;  %vm4714_vm4 = vmmov 0   ;;  %v3462_v36 = vld [vmem:[%s5544_s4 + $0x8] sm:$0xff] }
 0x909   : > { %4409 = vmatprep.subr.mxu0 %v4713_v34  ;;  %4417 = vmatprep.mubr.msk.f32.mxu0 %vm4714_vm4, %v4713_v34  ;;  %v3461_v37 = vld [vmem:[%s5544_s4] sm:$0xff] }
 0x90a   : > { %4410 = vmatpush3.msra.mxu0 %v3464_v33  ;;  %v3756_v38 = vld [vmem:[%s5545_s5] ss:$0 sm:$0xff] }
 0x90b   : > { %4411 = vmatprep.subr.mxu0 %v4713_v34 }
 0x90c   : > { %4412 = vmatpush3.msra.mxu0 %v3463_v35 }
 0x90d   : > { %4413 = vmatprep.subr.mxu0 %v4713_v34 }
 0x90e   : > { %4414 = vmatpush3.msra.mxu0 %v3462_v36 }
 0x90f   : > { %4415 = vmatprep.subr.mxu0 %v4713_v34 }
 0x910   : > { %4416 = vmatpush3.msra.mxu0 %v3461_v37 }
 0x911   : > { %4418 = vmatmul.mubr.msk.f32.vlgmr.msra.gmra.mxu0 %vm926_vm3, %v3455_v32 }
 0x9d1   : > { %v3541_v39 = vpop.f32.mrf.mxu0 }
 0x9d2   : > { %v3542_v40 = vadd.f32 %v3756_v38, %v3541_v39 }
 0x9d3   : > { %v4419_v41 = vpop.f32.mrf.mxu0 }
 0x9d4   : > { %3545 = vst [vmem:[#allocation7] sm:$0xff] %v3542_v40 }
 0x9d5 PF: > { %p4431_p3 = scmp.eq.s32.totalorder %s4770_s25, 1  ;;  %s4715_s17 = smov [#allocation7]  }
 0x9d6   : > { %s3553_s18 = sshll.u32 %s4715_s17, 4  ;;  %s3554_s18 = int_to_ptr.vmem [resolvable:$true] %s3553_s18 }
 0x9d7   : > { %s4644_s12 = scalar_lea.vmem %s3554_s18, 128  ;;  %p4651_p10 = scmp.lt.s32.totalorder %s3554_s18, %s3554_s18 }
 0x9d8   : > { %p4645_p4 = scmp.ne.s32.totalorder %s3554_s18, %s4644_s12  ;;  %p4652_p12 = scmp.lt.s32.totalorder %s4644_s12, %s4644_s12 }
 0x9da   : > { %p4646_p5 = pnand %p4645_p4, %p4431_p3  ;;  %p4653_p11 = por %p4652_p12, %p4651_p10 }
 0x9dc   : > { %p4647_p6 = pneg %p4646_p5 }
 0x9de   : > { %p4654_p13 = pnand %p4653_p11, %p4647_p6 }
 0x9e0   : > { %4657 = shalt.err (!%p4654_p13)
}
 0x9e1   : > { %4423 = dma.vmem_to_hbm [thread:$0]  (%p4431_p3), %s3554_s18, 128, %s5546_s6, [#allocation6]  }
 0x9e2   : > { %4689 = dma.done.wait (%p4431_p3), [#allocation6], 128  }
 0x9e3   : > { %4691 = vsyncadd (%p4431_p3), [#allocation6], 4294967168 }
 0x9e4 PF: > { %p17_p0 = scmp.ge.s32.totalorder %s4773_s26, 4   ;;  %s5552_s21 = smov %s4698_s22 }
 0x9e5   : > { %s5553_s22 = smov %s4702_s23  ;;  %s5554_s23 = smov %s4783_s29 }
 0x9e6   : > { %s5555_s24 = smov %s4773_s26  ;;  %19 = sbr.rel (!%p17_p0) target bundleno = 4 (0x4), region = 114 }
 0x9eb   :  { %3566 = vsyncpa [#allocation5], 1 }
 0x9ec   :  { %3568 = vsyncpa [#allocation5 + $0x1], 1 }
 0x9ed   :  { %3569 = vsyncpa [#allocation6], 1 }
 0x9ee   :  { %3571 = vsyncpa [#allocation6 + $0x1], 1 }

</bundles_post_ra>
